<compile_context>
chip_gen: v5e
topology: v5e:2x2
jax: 0.10.0
libtpu: 0.0.40
codegen_flags: <defaults>
</compile_context>

<pallas_src>
import functools

import jax
import jax.numpy as jnp
from jax import lax
from jax.experimental import pallas as pl
from jax.experimental.pallas import tpu as pltpu

# ---------------- config (mirrors the torch `config` module) ----------------
HIDDEN_SIZE = 16
EMBED_SIZE = 16
VOCAB_SIZE = 32          # len(v)
EPS = 1e-12
LAMBDA = 1.0
UNK_ID = 1
POINTER = True
COVERAGE = True


# =====================================================================
# Kernel 1: fused bidirectional encoder LSTM
# =====================================================================
def _enc_bilstm_kernel(emb_ref, wih_ref, whh_ref, b_ref,
                       out_ref, hfin_ref, cfin_ref,
                       h_sc, c_sc):
    t = pl.program_id(1)

    @pl.when(t == 0)
    def _():
        h_sc[...] = jnp.zeros_like(h_sc)
        c_sc[...] = jnp.zeros_like(c_sc)

    x = emb_ref[0]                 # (B, E)
    h = h_sc[...]
    c = c_sc[...]
    H = h.shape[-1]

    # gate order i, f, g, o (PyTorch convention)
    gates = (jnp.dot(x, wih_ref[0], preferred_element_type=jnp.float32)
             + jnp.dot(h, whh_ref[0], preferred_element_type=jnp.float32)
             + b_ref[0])
    i = jax.nn.sigmoid(gates[:, 0:H])
    f = jax.nn.sigmoid(gates[:, H:2 * H])
    g = jnp.tanh(gates[:, 2 * H:3 * H])
    o = jax.nn.sigmoid(gates[:, 3 * H:4 * H])
    c_new = f * c + i * g
    h_new = o * jnp.tanh(c_new)

    h_sc[...] = h_new
    c_sc[...] = c_new
    out_ref[0, 0] = h_new          # hidden at this source position
    hfin_ref[0] = h_new            # final state: last grid step of this dir wins
    cfin_ref[0] = c_new


def run_encoder(emb_enc, params):
    """emb_enc: (B, S, E) -> encoder_output (B, S, 2H) and reduced (h0, c0)."""
    B, S, E = emb_enc.shape
    H = HIDDEN_SIZE
    xs = jnp.swapaxes(emb_enc, 0, 1)                               # (S, B, E)
    wih = jnp.stack([params['enc_wih_f'], params['enc_wih_b']])    # (2, E, 4H)
    whh = jnp.stack([params['enc_whh_f'], params['enc_whh_b']])    # (2, H, 4H)
    b = jnp.stack([params['enc_b_f'], params['enc_b_b']])          # (2, 1, 4H)

    def src_t(d, t):
        # forward direction (d=0) visits source position t, backward visits S-1-t
        return t + d * (S - 1 - 2 * t)

    out, hfin, cfin = pl.pallas_call(
        _enc_bilstm_kernel,
        out_shape=(jax.ShapeDtypeStruct((2, S, B, H), jnp.float32),
                   jax.ShapeDtypeStruct((2, B, H), jnp.float32),
                   jax.ShapeDtypeStruct((2, B, H), jnp.float32)),
        grid_spec=pltpu.PrefetchScalarGridSpec(
            num_scalar_prefetch=0,
            grid=(2, S),
            in_specs=[
                pl.BlockSpec((1, B, E), lambda d, t: (src_t(d, t), 0, 0)),
                pl.BlockSpec((1, E, 4 * H), lambda d, t: (d, 0, 0)),
                pl.BlockSpec((1, H, 4 * H), lambda d, t: (d, 0, 0)),
                pl.BlockSpec((1, 1, 4 * H), lambda d, t: (d, 0, 0)),
            ],
            out_specs=[
                pl.BlockSpec((1, 1, B, H), lambda d, t: (d, src_t(d, t), 0, 0)),
                pl.BlockSpec((1, B, H), lambda d, t: (d, 0, 0)),
                pl.BlockSpec((1, B, H), lambda d, t: (d, 0, 0)),
            ],
            scratch_shapes=[pltpu.VMEM((B, H), jnp.float32),
                            pltpu.VMEM((B, H), jnp.float32)],
        ),
        compiler_params=pltpu.CompilerParams(
            # fwd/bwd directions are independent -> both TensorCores on v7x
            dimension_semantics=("parallel", "arbitrary")),
    )(xs, wih, whh, b)

    encoder_output = jnp.concatenate([out[0], out[1]], axis=-1)    # (S, B, 2H)
    encoder_output = jnp.swapaxes(encoder_output, 0, 1)            # (B, S, 2H)
    h0 = hfin[0] + hfin[1]                                         # ReduceState (sum)
    c0 = cfin[0] + cfin[1]
    return encoder_output, h0, c0


# =====================================================================
# Kernel 2: fully fused decoder step (attention + LSTM + head + pointer loss)
# =====================================================================
def _decoder_step_kernel(
        # per-step token inputs
        y_in_ref, y_tgt_ref,
        # sequence-level inputs (VMEM-resident across all decode steps)
        enc_ref, x_ref, mask_ref, h0_ref, c0_ref, emb_ref,
        # attention params
        wh_ref, ws_ref, wsb_ref, wc_ref, v_ref,
        # decoder LSTM params
        wih_ref, whh_ref, bl_ref,
        # head params
        w1_ref, b1_ref, w2_ref, b2_ref, wg_ref, bg_ref,
        # output: per-sample accumulated loss (resident accumulator)
        loss_ref,
        # scratch: decoder state, coverage, previously generated token
        h_sc, c_sc, cov_sc, xprev_sc,
        *, max_oov, teacher_forcing):
    t = pl.program_id(0)
    B, S, D = enc_ref.shape            # D = 2H
    H = h0_ref.shape[-1]
    E = emb_ref.shape[-1]
    V = emb_ref.shape[0]
    Vext = V + max_oov

    @pl.when(t == 0)
    def _():
        h_sc[...] = h0_ref[...]
        c_sc[...] = c0_ref[...]
        cov_sc[...] = jnp.zeros_like(cov_sc)
        xprev_sc[...] = jnp.zeros_like(xprev_sc)
        loss_ref[...] = jnp.zeros_like(loss_ref)

    # ---------- input token -> embedding (one-hot gather on the MXU) ----------
    tok = y_in_ref[0]                                     # (B, 1) int32
    if not teacher_forcing:
        tok = jnp.where(t == 0, tok, xprev_sc[...])
    tok = jnp.where(tok >= V, UNK_ID, tok)                # replace_oovs
    tok_oh = (tok == lax.broadcasted_iota(jnp.int32, (B, V), 1)).astype(jnp.float32)
    dec_emb = jnp.dot(tok_oh, emb_ref[...],
                      preferred_element_type=jnp.float32)             # (B, E)

    h = h_sc[...]
    c = c_sc[...]
    cov = cov_sc[...]
    enc = enc_ref[...]                                    # (B, S, 2H)
    mask = mask_ref[...]                                  # (B, S)

    # ---------- attention (uses the pre-update decoder state, as in the ref) --
    enc_f = jnp.dot(enc.reshape(B * S, D), wh_ref[...],
                    preferred_element_type=jnp.float32).reshape(B, S, D)
    # Ws([h; c]) as split matmuls (avoids an in-kernel lane-axis concat)
    dec_f = (jnp.dot(h, ws_ref[0:H, :], preferred_element_type=jnp.float32)
             + jnp.dot(c, ws_ref[H:2 * H, :], preferred_element_type=jnp.float32)
             + wsb_ref[...])                              # (B, 2H)
    cov_f = cov[:, :, None] * wc_ref[...].reshape(1, 1, D)
    att = jnp.tanh(enc_f + dec_f[:, None, :] + cov_f)     # (B, S, 2H)
    score = jnp.sum(att * v_ref[...].reshape(1, 1, D), axis=2)        # (B, S)

    # softmax over the sequence, then mask + renormalise (reference semantics;
    # an all-masked row would divide by zero exactly like the PyTorch model).
    score = score - jnp.max(score, axis=1, keepdims=True)
    e = jnp.exp(score)
    aw = e / jnp.sum(e, axis=1, keepdims=True)
    aw = aw * mask
    aw = aw / jnp.sum(aw, axis=1, keepdims=True)
    ctx = jnp.sum(aw[:, :, None] * enc, axis=1)           # (B, 2H)
    cov_new = cov + aw
    cov_sc[...] = cov_new

    # ---------- decoder LSTM cell ----------
    gates = (jnp.dot(dec_emb, wih_ref[...], preferred_element_type=jnp.float32)
             + jnp.dot(h, whh_ref[...], preferred_element_type=jnp.float32)
             + bl_ref[...])
    i = jax.nn.sigmoid(gates[:, 0:H])
    f = jax.nn.sigmoid(gates[:, H:2 * H])
    g = jnp.tanh(gates[:, 2 * H:3 * H])
    o = jax.nn.sigmoid(gates[:, 3 * H:4 * H])
    c_new = f * c + i * g
    h_new = o * jnp.tanh(c_new)
    h_sc[...] = h_new
    c_sc[...] = c_new

    # ---------- projection head ----------
    # W1([h_new; ctx]) as split matmuls
    ff1 = (jnp.dot(h_new, w1_ref[0:H, :], preferred_element_type=jnp.float32)
           + jnp.dot(ctx, w1_ref[H:3 * H, :], preferred_element_type=jnp.float32)
           + b1_ref[...])                                 # (B, H)
    ff2 = jnp.dot(ff1, w2_ref[...], preferred_element_type=jnp.float32) + b2_ref[...]
    ff2 = ff2 - jnp.max(ff2, axis=1, keepdims=True)
    pe = jnp.exp(ff2)
    p_vocab = pe / jnp.sum(pe, axis=1, keepdims=True)     # (B, V)

    # w_gen([ctx; h_new; c_new; emb]) as split matmuls
    p_gen = jax.nn.sigmoid(
        jnp.dot(ctx, wg_ref[0:2 * H, :], preferred_element_type=jnp.float32)
        + jnp.dot(h_new, wg_ref[2 * H:3 * H, :], preferred_element_type=jnp.float32)
        + jnp.dot(c_new, wg_ref[3 * H:4 * H, :], preferred_element_type=jnp.float32)
        + jnp.dot(dec_emb, wg_ref[4 * H:4 * H + E, :],
                  preferred_element_type=jnp.float32)
        + bg_ref[...])                                    # (B, 1)
    p_gen = jnp.clip(p_gen, 0.001, 0.999)

    # ---------- pointer final distribution ----------
    # p_vocab zero-padded into the extended vocab with a (V, Vext) selection
    # matmul (no in-kernel lane concatenation needed).
    pad_mat = (lax.broadcasted_iota(jnp.int32, (V, Vext), 0)
               == lax.broadcasted_iota(jnp.int32, (V, Vext), 1)).astype(jnp.float32)
    p_vocab_w = jnp.dot(p_gen * p_vocab, pad_mat,
                        preferred_element_type=jnp.float32)           # (B, Vext)
    aw_w = (1.0 - p_gen) * aw                                         # (B, S)
    x_ids = x_ref[...]                                                # (B, S) int32

    # scatter-add of attention mass onto source token ids, chunked over S so the
    # one-hot buffer never exceeds (B, SCHUNK, Vext) floats (VMEM-bounded even
    # at realistic S / vocab sizes, unlike a full (B, S, Vext) one-hot).
    SCHUNK = S if S <= 8 else 8
    scattered = jnp.zeros((B, Vext), jnp.float32)
    for s0 in range(0, S, SCHUNK):
        ids_c = x_ids[:, s0:s0 + SCHUNK]
        aw_c = aw_w[:, s0:s0 + SCHUNK]
        chunk = ids_c.shape[1]
        oh = (ids_c[:, :, None]
              == lax.broadcasted_iota(jnp.int32, (B, chunk, Vext), 2)
              ).astype(jnp.float32)
        scattered = scattered + jnp.sum(aw_c[:, :, None] * oh, axis=1)
    final_dist = p_vocab_w + scattered                                # (B, Vext)

    # ---------- per-step loss (accumulated in the resident output block) ----------
    y_t = y_tgt_ref[0]                                                # (B, 1) int32
    y_oh = (y_t == lax.broadcasted_iota(jnp.int32, (B, Vext), 1)).astype(jnp.float32)
    target = jnp.sum(final_dist * y_oh, axis=1, keepdims=True)        # (B, 1)
    step_mask = (y_t != 0).astype(jnp.float32)
    cov_loss = jnp.sum(jnp.minimum(aw, cov_new), axis=1, keepdims=True)
    step_loss = (-jnp.log(target + EPS) + LAMBDA * cov_loss) * step_mask
    loss_ref[...] = loss_ref[...] + step_loss

    # ---------- next input token (only needed without teacher forcing) ----------
    if not teacher_forcing:
        m = jnp.max(final_dist, axis=1, keepdims=True)
        iota_ext = lax.broadcasted_iota(jnp.int32, (B, Vext), 1)
        cand = jnp.where(final_dist == m, iota_ext, Vext)
        xprev_sc[...] = jnp.min(cand, axis=1, keepdims=True)          # argmax (first max)


def run_decoder(params, encoder_output, h0, c0, x, x_mask, y,
                *, max_oov, teacher_forcing):
    B, S, D = encoder_output.shape
    H = HIDDEN_SIZE
    E = EMBED_SIZE
    V = VOCAB_SIZE
    T = y.shape[1] - 1

    y_in = jnp.swapaxes(y[:, :T], 0, 1)[:, :, None].astype(jnp.int32)    # (T, B, 1)
    y_tgt = jnp.swapaxes(y[:, 1:], 0, 1)[:, :, None].astype(jnp.int32)   # (T, B, 1)

    kernel = functools.partial(_decoder_step_kernel,
                               max_oov=max_oov, teacher_forcing=teacher_forcing)

    def resident(shape):
        nd = len(shape)

        def imap(t):
            return (0,) * nd

        return pl.BlockSpec(shape, imap)

    in_specs = [
        pl.BlockSpec((1, B, 1), lambda t: (t, 0, 0)),      # y_in (per step)
        pl.BlockSpec((1, B, 1), lambda t: (t, 0, 0)),      # y_tgt (per step)
        resident((B, S, D)),                               # encoder output
        resident((B, S)),                                  # x ids (extended vocab)
        resident((B, S)),                                  # padding mask
        resident((B, H)), resident((B, H)),                # h0, c0
        resident((V, E)),                                  # decoder embedding table
        resident((D, D)),                                  # att Wh
        resident((D, D)),                                  # att Ws
        resident((1, D)),                                  # att Ws bias
        resident((1, D)),                                  # att wc
        resident((1, D)),                                  # att v
        resident((E, 4 * H)), resident((H, 4 * H)), resident((1, 4 * H)),  # dec LSTM
        resident((3 * H, H)), resident((1, H)),            # W1
        resident((H, V)), resident((1, V)),                # W2
        resident((4 * H + E, 1)), resident((1, 1)),        # w_gen
    ]

    loss = pl.pallas_call(
        kernel,
        out_shape=jax.ShapeDtypeStruct((B, 1), jnp.float32),
        grid_spec=pltpu.PrefetchScalarGridSpec(
            num_scalar_prefetch=0,
            grid=(T,),
            in_specs=in_specs,
            out_specs=pl.BlockSpec((B, 1), lambda t: (0, 0)),
            scratch_shapes=[pltpu.VMEM((B, H), jnp.float32),   # h
                            pltpu.VMEM((B, H), jnp.float32),   # c
                            pltpu.VMEM((B, S), jnp.float32),   # coverage
                            pltpu.VMEM((B, 1), jnp.int32)],    # generated token
        ),
        compiler_params=pltpu.CompilerParams(
            dimension_semantics=("arbitrary",)),
    )(y_in, y_tgt, encoder_output, x.astype(jnp.int32), x_mask, h0, c0,
      params['emb_dec'],
      params['att_wh'], params['att_ws'], params['att_wsb'],
      params['att_wc'], params['att_v'],
      params['dec_wih'], params['dec_whh'], params['dec_b'],
      params['dec_w1'], params['dec_b1'], params['dec_w2'], params['dec_b2'],
      params['dec_wgen'], params['dec_bgen'])
    return loss[:, 0]


# ---------------- params ----------------
def init_params(key):
    H, E, V = HIDDEN_SIZE, EMBED_SIZE, VOCAB_SIZE
    keys = iter(jax.random.split(key, 32))

    def unif(shape, bound):
        return jax.random.uniform(next(keys), shape, jnp.float32, -bound, bound)

    bl_h = 1.0 / (H ** 0.5)
    bl_2h = 1.0 / ((2 * H) ** 0.5)
    p = {}
    p['emb_enc'] = jax.random.normal(next(keys), (V, E), jnp.float32)
    p['emb_dec'] = jax.random.normal(next(keys), (V, E), jnp.float32)
    # encoder bi-LSTM
    for d in ('f', 'b'):
        p[f'enc_wih_{d}'] = unif((E, 4 * H), bl_h)
        p[f'enc_whh_{d}'] = unif((H, 4 * H), bl_h)
        p[f'enc_b_{d}'] = unif((1, 4 * H), bl_h)
    # decoder LSTM
    p['dec_wih'] = unif((E, 4 * H), bl_h)
    p['dec_whh'] = unif((H, 4 * H), bl_h)
    p['dec_b'] = unif((1, 4 * H), bl_h)
    # attention
    p['att_wh'] = unif((2 * H, 2 * H), bl_2h)
    p['att_ws'] = unif((2 * H, 2 * H), bl_2h)
    p['att_wsb'] = unif((1, 2 * H), bl_2h)
    p['att_wc'] = unif((1, 2 * H), 1.0)            # wc: Linear(1, 2H), fan_in = 1
    p['att_v'] = unif((1, 2 * H), bl_2h)
    # decoder head
    p['dec_w1'] = unif((3 * H, H), 1.0 / ((3 * H) ** 0.5))
    p['dec_b1'] = unif((1, H), 1.0 / ((3 * H) ** 0.5))
    p['dec_w2'] = unif((H, V), bl_h)
    p['dec_b2'] = unif((1, V), bl_h)
    p['dec_wgen'] = unif((4 * H + E, 1), 1.0 / ((4 * H + E) ** 0.5))
    p['dec_bgen'] = unif((1, 1), 1.0 / ((4 * H + E) ** 0.5))
    return p


# ---------------- forward (mirrors PGN.forward -> scalar batch loss) ----------------
def pgn_forward(params, x, y, *, max_oov, teacher_forcing=True):
    x = x.astype(jnp.int32)
    y = y.astype(jnp.int32)
    x_copy = jnp.where(x >= VOCAB_SIZE, UNK_ID, x)         # replace_oovs
    x_mask = (x != 0).astype(jnp.float32)

    # encoder embedding gather stays in JAX glue (table lookup)
    emb_enc = params['emb_enc'][x_copy]                    # (B, S, E)
    encoder_output, h0, c0 = run_encoder(emb_enc, params)

    sample_losses = run_decoder(params, encoder_output, h0, c0, x, x_mask, y,
                                max_oov=max_oov, teacher_forcing=teacher_forcing)

    seq_len_mask = (y != 0).astype(jnp.float32)
    batch_seq_len = jnp.sum(seq_len_mask, axis=1)
    return jnp.mean(sample_losses / batch_seq_len)


pgn_loss = jax.jit(pgn_forward, static_argnames=("max_oov", "teacher_forcing"))


if __name__ == "__main__":
    key = jax.random.PRNGKey(0)
    pkey, xkey, ykey = jax.random.split(key, 3)
    params = init_params(pkey)

    B, S, Y_LEN = 2, 8, 5
    max_oov = 2
    # source tokens may include OOV ids in [VOCAB_SIZE, VOCAB_SIZE + max_oov)
    x = jax.random.randint(xkey, (B, S), 1, VOCAB_SIZE + max_oov).astype(jnp.int32)
    x = x.at[:, -2:].set(0)                      # padding positions
    y = jax.random.randint(ykey, (B, Y_LEN), 1, VOCAB_SIZE).astype(jnp.int32)
    y = y.at[1, -1].set(0)                       # padded target tail
    len_oovs = jnp.array([max_oov, 1], jnp.int32)

    # max_oov is resolved to a static Python int on the host (outside jit)
    loss = pgn_loss(params, x, y, max_oov=int(len_oovs.max()), teacher_forcing=True)
    jax.block_until_ready(loss)
    print("KERNEL_OK")
</pallas_src>

<mosaic_0001>
module attributes {stable_mosaic.version = 11 : i64} {
  func.func @_enc_bilstm_kernel(%arg0: i32, %arg1: i32, %arg2: memref<1x2x16xf32, #tpu.memory_space<vmem>>, %arg3: memref<1x16x64xf32, #tpu.memory_space<vmem>>, %arg4: memref<1x16x64xf32, #tpu.memory_space<vmem>>, %arg5: memref<1x1x64xf32, #tpu.memory_space<vmem>>, %arg6: memref<1x1x2x16xf32, #tpu.memory_space<vmem>>, %arg7: memref<1x2x16xf32, #tpu.memory_space<vmem>>, %arg8: memref<1x2x16xf32, #tpu.memory_space<vmem>>, %arg9: memref<2x16xf32, #tpu.memory_space<vmem>>, %arg10: memref<2x16xf32, #tpu.memory_space<vmem>>) attributes {dimension_semantics = [#tpu.dimension_semantics<parallel>, #tpu.dimension_semantics<arbitrary>], iteration_bounds = array<i64: 2, 8>, scalar_prefetch = 0 : i64, scratch_operands = 2 : i64, tpu.core_type = #tpu.core_type<tc>, window_params = [{transform_indices = @transform_0, window_bounds = array<i64: 1, 2, 16>}, {transform_indices = @transform_1, window_bounds = array<i64: 1, 16, 64>}, {transform_indices = @transform_2, window_bounds = array<i64: 1, 16, 64>}, {transform_indices = @transform_3, window_bounds = array<i64: 1, 1, 64>}, {transform_indices = @transform_4, window_bounds = array<i64: 1, 1, 2, 16>}, {transform_indices = @transform_5, window_bounds = array<i64: 1, 2, 16>}, {transform_indices = @transform_6, window_bounds = array<i64: 1, 2, 16>}]} {
    %c0_i32 = arith.constant 0 : i32
    %0 = arith.cmpi eq, %arg1, %c0_i32 : i32
    %1 = arith.extui %0 : i1 to i32
    %c0_i32_0 = arith.constant 0 : i32
    %2 = arith.cmpi ne, %1, %c0_i32_0 : i32
    scf.if %2 {
      %cst_34 = arith.constant 0.000000e+00 : f32
      %54 = vector.broadcast %cst_34 : f32 to vector<2x16xf32>
      %c0_35 = arith.constant 0 : index
      %c0_36 = arith.constant 0 : index
      %55 = vector.load %arg9[%c0_35, %c0_36] : memref<2x16xf32, #tpu.memory_space<vmem>>, vector<2x16xf32>
      tpu.vector_store %arg9[%c0_35, %c0_36], %54 {strides = array<i32>} : memref<2x16xf32, #tpu.memory_space<vmem>>, vector<2x16xf32>,
      %cst_37 = arith.constant 0.000000e+00 : f32
      %56 = vector.broadcast %cst_37 : f32 to vector<2x16xf32>
      %c0_38 = arith.constant 0 : index
      %c0_39 = arith.constant 0 : index
      %57 = vector.load %arg10[%c0_38, %c0_39] : memref<2x16xf32, #tpu.memory_space<vmem>>, vector<2x16xf32>
      tpu.vector_store %arg10[%c0_38, %c0_39], %56 {strides = array<i32>} : memref<2x16xf32, #tpu.memory_space<vmem>>, vector<2x16xf32>,
    } else {
    }
    %c0 = arith.constant 0 : index
    %c0_1 = arith.constant 0 : index
    %c0_2 = arith.constant 0 : index
    %3 = vector.load %arg2[%c0, %c0_1, %c0_2] : memref<1x2x16xf32, #tpu.memory_space<vmem>>, vector<1x2x16xf32>
    %4 = vector.shape_cast %3 : vector<1x2x16xf32> to vector<2x16xf32>
    %c0_3 = arith.constant 0 : index
    %c0_4 = arith.constant 0 : index
    %5 = vector.load %arg9[%c0_3, %c0_4] : memref<2x16xf32, #tpu.memory_space<vmem>>, vector<2x16xf32>
    %c0_5 = arith.constant 0 : index
    %c0_6 = arith.constant 0 : index
    %6 = vector.load %arg10[%c0_5, %c0_6] : memref<2x16xf32, #tpu.memory_space<vmem>>, vector<2x16xf32>
    %c0_7 = arith.constant 0 : index
    %c0_8 = arith.constant 0 : index
    %c0_9 = arith.constant 0 : index
    %7 = vector.load %arg3[%c0_7, %c0_8, %c0_9] : memref<1x16x64xf32, #tpu.memory_space<vmem>>, vector<1x16x64xf32>
    %8 = vector.shape_cast %7 : vector<1x16x64xf32> to vector<16x64xf32>
    %cst = arith.constant dense<0.000000e+00> : vector<2x64xf32>
    %9 = tpu.matmul %4, %8, %cst {dimension_numbers = #tpu.dot_dimension_numbers<[1], [0], [0], [1], [0, 0, 1, 1], [], []>} : vector<2x16xf32>, vector<16x64xf32>, vector<2x64xf32> -> vector<2x64xf32>
    %c0_10 = arith.constant 0 : index
    %c0_11 = arith.constant 0 : index
    %c0_12 = arith.constant 0 : index
    %10 = vector.load %arg4[%c0_10, %c0_11, %c0_12] : memref<1x16x64xf32, #tpu.memory_space<vmem>>, vector<1x16x64xf32>
    %11 = vector.shape_cast %10 : vector<1x16x64xf32> to vector<16x64xf32>
    %cst_13 = arith.constant dense<0.000000e+00> : vector<2x64xf32>
    %12 = tpu.matmul %5, %11, %cst_13 {dimension_numbers = #tpu.dot_dimension_numbers<[1], [0], [0], [1], [0, 0, 1, 1], [], []>} : vector<2x16xf32>, vector<16x64xf32>, vector<2x64xf32> -> vector<2x64xf32>
    %13 = arith.addf %9, %12 : vector<2x64xf32>
    %c0_14 = arith.constant 0 : index
    %c0_15 = arith.constant 0 : index
    %c0_16 = arith.constant 0 : index
    %14 = vector.load %arg5[%c0_14, %c0_15, %c0_16] : memref<1x1x64xf32, #tpu.memory_space<vmem>>, vector<1x1x64xf32>
    %15 = vector.shape_cast %14 : vector<1x1x64xf32> to vector<1x64xf32>
    %16 = vector.broadcast %15 : vector<1x64xf32> to vector<2x64xf32>
    %17 = arith.addf %13, %16 : vector<2x64xf32>
    %18 = vector.extract_strided_slice %17 {offsets = [0, 0], sizes = [2, 16], strides = [1, 1]} : vector<2x64xf32> to vector<2x16xf32>
    %19 = arith.negf %18 : vector<2x16xf32>
    %20 = math.exp %19 : vector<2x16xf32>
    %cst_17 = arith.constant 1.000000e+00 : f32
    %21 = vector.broadcast %cst_17 : f32 to vector<2x16xf32>
    %22 = arith.addf %21, %20 : vector<2x16xf32>
    %23 = arith.divf %21, %22 : vector<2x16xf32>
    %24 = vector.extract_strided_slice %17 {offsets = [0, 16], sizes = [2, 16], strides = [1, 1]} : vector<2x64xf32> to vector<2x16xf32>
    %25 = arith.negf %24 : vector<2x16xf32>
    %26 = math.exp %25 : vector<2x16xf32>
    %cst_18 = arith.constant 1.000000e+00 : f32
    %27 = vector.broadcast %cst_18 : f32 to vector<2x16xf32>
    %28 = arith.addf %27, %26 : vector<2x16xf32>
    %29 = arith.divf %27, %28 : vector<2x16xf32>
    %30 = vector.extract_strided_slice %17 {offsets = [0, 32], sizes = [2, 16], strides = [1, 1]} : vector<2x64xf32> to vector<2x16xf32>
    %31 = math.tanh %30 : vector<2x16xf32>
    %32 = vector.extract_strided_slice %17 {offsets = [0, 48], sizes = [2, 16], strides = [1, 1]} : vector<2x64xf32> to vector<2x16xf32>
    %33 = arith.negf %32 : vector<2x16xf32>
    %34 = math.exp %33 : vector<2x16xf32>
    %cst_19 = arith.constant 1.000000e+00 : f32
    %35 = vector.broadcast %cst_19 : f32 to vector<2x16xf32>
    %36 = arith.addf %35, %34 : vector<2x16xf32>
    %37 = arith.divf %35, %36 : vector<2x16xf32>
    %38 = arith.mulf %29, %6 : vector<2x16xf32>
    %39 = arith.mulf %23, %31 : vector<2x16xf32>
    %40 = arith.addf %38, %39 : vector<2x16xf32>
    %41 = math.tanh %40 : vector<2x16xf32>
    %42 = arith.mulf %37, %41 : vector<2x16xf32>
    %c0_20 = arith.constant 0 : index
    %c0_21 = arith.constant 0 : index
    %43 = vector.load %arg9[%c0_20, %c0_21] : memref<2x16xf32, #tpu.memory_space<vmem>>, vector<2x16xf32>
    tpu.vector_store %arg9[%c0_20, %c0_21], %42 {strides = array<i32>} : memref<2x16xf32, #tpu.memory_space<vmem>>, vector<2x16xf32>,
    %c0_22 = arith.constant 0 : index
    %c0_23 = arith.constant 0 : index
    %44 = vector.load %arg10[%c0_22, %c0_23] : memref<2x16xf32, #tpu.memory_space<vmem>>, vector<2x16xf32>
    tpu.vector_store %arg10[%c0_22, %c0_23], %40 {strides = array<i32>} : memref<2x16xf32, #tpu.memory_space<vmem>>, vector<2x16xf32>,
    %c0_24 = arith.constant 0 : index
    %c0_25 = arith.constant 0 : index
    %c0_26 = arith.constant 0 : index
    %c0_27 = arith.constant 0 : index
    %45 = vector.load %arg6[%c0_24, %c0_25, %c0_26, %c0_27] : memref<1x1x2x16xf32, #tpu.memory_space<vmem>>, vector<1x1x2x16xf32>
    %46 = vector.shape_cast %45 : vector<1x1x2x16xf32> to vector<2x16xf32>
    %47 = vector.shape_cast %42 : vector<2x16xf32> to vector<1x1x2x16xf32>
    tpu.vector_store %arg6[%c0_24, %c0_25, %c0_26, %c0_27], %47 {strides = array<i32>} : memref<1x1x2x16xf32, #tpu.memory_space<vmem>>, vector<1x1x2x16xf32>,
    %c0_28 = arith.constant 0 : index
    %c0_29 = arith.constant 0 : index
    %c0_30 = arith.constant 0 : index
    %48 = vector.load %arg7[%c0_28, %c0_29, %c0_30] : memref<1x2x16xf32, #tpu.memory_space<vmem>>, vector<1x2x16xf32>
    %49 = vector.shape_cast %48 : vector<1x2x16xf32> to vector<2x16xf32>
    %50 = vector.shape_cast %42 : vector<2x16xf32> to vector<1x2x16xf32>
    tpu.vector_store %arg7[%c0_28, %c0_29, %c0_30], %50 {strides = array<i32>} : memref<1x2x16xf32, #tpu.memory_space<vmem>>, vector<1x2x16xf32>,
    %c0_31 = arith.constant 0 : index
    %c0_32 = arith.constant 0 : index
    %c0_33 = arith.constant 0 : index
    %51 = vector.load %arg8[%c0_31, %c0_32, %c0_33] : memref<1x2x16xf32, #tpu.memory_space<vmem>>, vector<1x2x16xf32>
    %52 = vector.shape_cast %51 : vector<1x2x16xf32> to vector<2x16xf32>
    %53 = vector.shape_cast %40 : vector<2x16xf32> to vector<1x2x16xf32>
    tpu.vector_store %arg8[%c0_31, %c0_32, %c0_33], %53 {strides = array<i32>} : memref<1x2x16xf32, #tpu.memory_space<vmem>>, vector<1x2x16xf32>,
    return
  }
  func.func @transform_0(%arg0: i32, %arg1: i32) -> (i32, i32, i32) {
    %c2_i32 = arith.constant 2 : i32
    %0 = arith.muli %c2_i32, %arg1 : i32
    %c7_i32 = arith.constant 7 : i32
    %1 = arith.subi %c7_i32, %0 : i32
    %2 = arith.muli %arg0, %1 : i32
    %3 = arith.addi %arg1, %2 : i32
    %c0_i32 = arith.constant 0 : i32
    %c0_i32_0 = arith.constant 0 : i32
    %c0_i32_1 = arith.constant 0 : i32
    return %3, %c0_i32, %c0_i32_0 : i32, i32, i32
  }
  func.func @transform_1(%arg0: i32, %arg1: i32) -> (i32, i32, i32) {
    %c0_i32 = arith.constant 0 : i32
    %c0_i32_0 = arith.constant 0 : i32
    %c0_i32_1 = arith.constant 0 : i32
    return %arg0, %c0_i32, %c0_i32_0 : i32, i32, i32
  }
  func.func @transform_2(%arg0: i32, %arg1: i32) -> (i32, i32, i32) {
    %c0_i32 = arith.constant 0 : i32
    %c0_i32_0 = arith.constant 0 : i32
    %c0_i32_1 = arith.constant 0 : i32
    return %arg0, %c0_i32, %c0_i32_0 : i32, i32, i32
  }
  func.func @transform_3(%arg0: i32, %arg1: i32) -> (i32, i32, i32) {
    %c0_i32 = arith.constant 0 : i32
    %c0_i32_0 = arith.constant 0 : i32
    %c0_i32_1 = arith.constant 0 : i32
    return %arg0, %c0_i32, %c0_i32_0 : i32, i32, i32
  }
  func.func @transform_4(%arg0: i32, %arg1: i32) -> (i32, i32, i32, i32) {
    %c2_i32 = arith.constant 2 : i32
    %0 = arith.muli %c2_i32, %arg1 : i32
    %c7_i32 = arith.constant 7 : i32
    %1 = arith.subi %c7_i32, %0 : i32
    %2 = arith.muli %arg0, %1 : i32
    %3 = arith.addi %arg1, %2 : i32
    %c0_i32 = arith.constant 0 : i32
    %c0_i32_0 = arith.constant 0 : i32
    %c0_i32_1 = arith.constant 0 : i32
    return %arg0, %3, %c0_i32, %c0_i32_0 : i32, i32, i32, i32
  }
  func.func @transform_5(%arg0: i32, %arg1: i32) -> (i32, i32, i32) {
    %c0_i32 = arith.constant 0 : i32
    %c0_i32_0 = arith.constant 0 : i32
    %c0_i32_1 = arith.constant 0 : i32
    return %arg0, %c0_i32, %c0_i32_0 : i32, i32, i32
  }
  func.func @transform_6(%arg0: i32, %arg1: i32) -> (i32, i32, i32) {
    %c0_i32 = arith.constant 0 : i32
    %c0_i32_0 = arith.constant 0 : i32
    %c0_i32_1 = arith.constant 0 : i32
    return %arg0, %c0_i32, %c0_i32_0 : i32, i32, i32
  }
}

module attributes {stable_mosaic.version = 11 : i64} {
  func.func @_decoder_step_kernel(%arg0: i32, %arg1: memref<1x2x1xi32, #tpu.memory_space<vmem>>, %arg2: memref<1x2x1xi32, #tpu.memory_space<vmem>>, %arg3: memref<2x8x32xf32, #tpu.memory_space<vmem>>, %arg4: memref<2x8xi32, #tpu.memory_space<vmem>>, %arg5: memref<2x8xf32, #tpu.memory_space<vmem>>, %arg6: memref<2x16xf32, #tpu.memory_space<vmem>>, %arg7: memref<2x16xf32, #tpu.memory_space<vmem>>, %arg8: memref<32x16xf32, #tpu.memory_space<vmem>>, %arg9: memref<32x32xf32, #tpu.memory_space<vmem>>, %arg10: memref<32x32xf32, #tpu.memory_space<vmem>>, %arg11: memref<1x32xf32, #tpu.memory_space<vmem>>, %arg12: memref<1x32xf32, #tpu.memory_space<vmem>>, %arg13: memref<1x32xf32, #tpu.memory_space<vmem>>, %arg14: memref<16x64xf32, #tpu.memory_space<vmem>>, %arg15: memref<16x64xf32, #tpu.memory_space<vmem>>, %arg16: memref<1x64xf32, #tpu.memory_space<vmem>>, %arg17: memref<48x16xf32, #tpu.memory_space<vmem>>, %arg18: memref<1x16xf32, #tpu.memory_space<vmem>>, %arg19: memref<16x32xf32, #tpu.memory_space<vmem>>, %arg20: memref<1x32xf32, #tpu.memory_space<vmem>>, %arg21: memref<80x1xf32, #tpu.memory_space<vmem>>, %arg22: memref<1x1xf32, #tpu.memory_space<vmem>>, %arg23: memref<2x1xf32, #tpu.memory_space<vmem>>, %arg24: memref<2x16xf32, #tpu.memory_space<vmem>>, %arg25: memref<2x16xf32, #tpu.memory_space<vmem>>, %arg26: memref<2x8xf32, #tpu.memory_space<vmem>>, %arg27: memref<2x1xi32, #tpu.memory_space<vmem>>) attributes {dimension_semantics = [#tpu.dimension_semantics<arbitrary>], iteration_bounds = array<i64: 4>, scalar_prefetch = 0 : i64, scratch_operands = 4 : i64, tpu.core_type = #tpu.core_type<tc>, window_params = [{transform_indices = @transform_0, window_bounds = array<i64: 1, 2, 1>}, {transform_indices = @transform_1, window_bounds = array<i64: 1, 2, 1>}, {pipeline_mode = #tpu.pipeline_mode<synchronous>, transform_indices = @transform_2, window_bounds = array<i64: 2, 8, 32>}, {pipeline_mode = #tpu.pipeline_mode<synchronous>, transform_indices = @transform_3, window_bounds = array<i64: 2, 8>}, {pipeline_mode = #tpu.pipeline_mode<synchronous>, transform_indices = @transform_4, window_bounds = array<i64: 2, 8>}, {pipeline_mode = #tpu.pipeline_mode<synchronous>, transform_indices = @transform_5, window_bounds = array<i64: 2, 16>}, {pipeline_mode = #tpu.pipeline_mode<synchronous>, transform_indices = @transform_6, window_bounds = array<i64: 2, 16>}, {pipeline_mode = #tpu.pipeline_mode<synchronous>, transform_indices = @transform_7, window_bounds = array<i64: 32, 16>}, {pipeline_mode = #tpu.pipeline_mode<synchronous>, transform_indices = @transform_8, window_bounds = array<i64: 32, 32>}, {pipeline_mode = #tpu.pipeline_mode<synchronous>, transform_indices = @transform_9, window_bounds = array<i64: 32, 32>}, {pipeline_mode = #tpu.pipeline_mode<synchronous>, transform_indices = @transform_10, window_bounds = array<i64: 1, 32>}, {pipeline_mode = #tpu.pipeline_mode<synchronous>, transform_indices = @transform_11, window_bounds = array<i64: 1, 32>}, {pipeline_mode = #tpu.pipeline_mode<synchronous>, transform_indices = @transform_12, window_bounds = array<i64: 1, 32>}, {pipeline_mode = #tpu.pipeline_mode<synchronous>, transform_indices = @transform_13, window_bounds = array<i64: 16, 64>}, {pipeline_mode = #tpu.pipeline_mode<synchronous>, transform_indices = @transform_14, window_bounds = array<i64: 16, 64>}, {pipeline_mode = #tpu.pipeline_mode<synchronous>, transform_indices = @transform_15, window_bounds = array<i64: 1, 64>}, {pipeline_mode = #tpu.pipeline_mode<synchronous>, transform_indices = @transform_16, window_bounds = array<i64: 48, 16>}, {pipeline_mode = #tpu.pipeline_mode<synchronous>, transform_indices = @transform_17, window_bounds = array<i64: 1, 16>}, {pipeline_mode = #tpu.pipeline_mode<synchronous>, transform_indices = @transform_18, window_bounds = array<i64: 16, 32>}, {pipeline_mode = #tpu.pipeline_mode<synchronous>, transform_indices = @transform_19, window_bounds = array<i64: 1, 32>}, {pipeline_mode = #tpu.pipeline_mode<synchronous>, transform_indices = @transform_20, window_bounds = array<i64: 80, 1>}, {pipeline_mode = #tpu.pipeline_mode<synchronous>, transform_indices = @transform_21, window_bounds = array<i64: 1, 1>}, {pipeline_mode = #tpu.pipeline_mode<synchronous>, transform_indices = @transform_22, window_bounds = array<i64: 2, 1>}]} {
    %c0_i32 = arith.constant 0 : i32
    %0 = arith.cmpi eq, %arg0, %c0_i32 : i32
    %1 = arith.extui %0 : i1 to i32
    %c0_i32_0 = arith.constant 0 : i32
    %2 = arith.cmpi ne, %1, %c0_i32_0 : i32
    scf.if %2 {
      %c0_100 = arith.constant 0 : index
      %c0_101 = arith.constant 0 : index
      %204 = vector.load %arg6[%c0_100, %c0_101] : memref<2x16xf32, #tpu.memory_space<vmem>>, vector<2x16xf32>
      %c0_102 = arith.constant 0 : index
      %c0_103 = arith.constant 0 : index
      %205 = vector.load %arg24[%c0_102, %c0_103] : memref<2x16xf32, #tpu.memory_space<vmem>>, vector<2x16xf32>
      tpu.vector_store %arg24[%c0_102, %c0_103], %204 {strides = array<i32>} : memref<2x16xf32, #tpu.memory_space<vmem>>, vector<2x16xf32>,
      %c0_104 = arith.constant 0 : index
      %c0_105 = arith.constant 0 : index
      %206 = vector.load %arg7[%c0_104, %c0_105] : memref<2x16xf32, #tpu.memory_space<vmem>>, vector<2x16xf32>
      %c0_106 = arith.constant 0 : index
      %c0_107 = arith.constant 0 : index
      %207 = vector.load %arg25[%c0_106, %c0_107] : memref<2x16xf32, #tpu.memory_space<vmem>>, vector<2x16xf32>
      tpu.vector_store %arg25[%c0_106, %c0_107], %206 {strides = array<i32>} : memref<2x16xf32, #tpu.memory_space<vmem>>, vector<2x16xf32>,
      %cst_108 = arith.constant 0.000000e+00 : f32
      %208 = vector.broadcast %cst_108 : f32 to vector<2x8xf32>
      %c0_109 = arith.constant 0 : index
      %c0_110 = arith.constant 0 : index
      %209 = vector.load %arg26[%c0_109, %c0_110] : memref<2x8xf32, #tpu.memory_space<vmem>>, vector<2x8xf32>
      tpu.vector_store %arg26[%c0_109, %c0_110], %208 {strides = array<i32>} : memref<2x8xf32, #tpu.memory_space<vmem>>, vector<2x8xf32>,
      %c0_i32_111 = arith.constant 0 : i32
      %210 = vector.broadcast %c0_i32_111 : i32 to vector<2x1xi32>
      %c0_112 = arith.constant 0 : index
      %c0_113 = arith.constant 0 : index
      %211 = vector.load %arg27[%c0_112, %c0_113] : memref<2x1xi32, #tpu.memory_space<vmem>>, vector<2x1xi32>
      tpu.vector_store %arg27[%c0_112, %c0_113], %210 {strides = array<i32>} : memref<2x1xi32, #tpu.memory_space<vmem>>, vector<2x1xi32>,
      %cst_114 = arith.constant 0.000000e+00 : f32
      %212 = vector.broadcast %cst_114 : f32 to vector<2x1xf32>
      %c0_115 = arith.constant 0 : index
      %c0_116 = arith.constant 0 : index
      %213 = vector.load %arg23[%c0_115, %c0_116] : memref<2x1xf32, #tpu.memory_space<vmem>>, vector<2x1xf32>
      tpu.vector_store %arg23[%c0_115, %c0_116], %212 {strides = array<i32>} : memref<2x1xf32, #tpu.memory_space<vmem>>, vector<2x1xf32>,
    } else {
    }
    %c0 = arith.constant 0 : index
    %c0_1 = arith.constant 0 : index
    %c0_2 = arith.constant 0 : index
    %3 = vector.load %arg1[%c0, %c0_1, %c0_2] : memref<1x2x1xi32, #tpu.memory_space<vmem>>, vector<1x2x1xi32>
    %4 = vector.shape_cast %3 : vector<1x2x1xi32> to vector<2x1xi32>
    %c32_i32 = arith.constant 32 : i32
    %5 = vector.broadcast %c32_i32 : i32 to vector<2x1xi32>
    %6 = arith.cmpi sge, %4, %5 : vector<2x1xi32>
    %c1_i32 = arith.constant 1 : i32
    %7 = vector.broadcast %c1_i32 : i32 to vector<2x1xi32>
    %8 = arith.select %6, %7, %4 : vector<2x1xi1>, vector<2x1xi32>
    %9 = tpu.iota {dimensions = array<i32: 1>} : vector<2x32xi32>
    %10 = vector.broadcast %8 : vector<2x1xi32> to vector<2x32xi32>
    %11 = arith.cmpi eq, %10, %9 : vector<2x32xi32>
    %12 = arith.extui %11 : vector<2x32xi1> to vector<2x32xi32>
    %13 = arith.sitofp %12 : vector<2x32xi32> to vector<2x32xf32>
    %c0_3 = arith.constant 0 : index
    %c0_4 = arith.constant 0 : index
    %14 = vector.load %arg8[%c0_3, %c0_4] : memref<32x16xf32, #tpu.memory_space<vmem>>, vector<32x16xf32>
    %cst = arith.constant dense<0.000000e+00> : vector<2x16xf32>
    %15 = tpu.matmul %13, %14, %cst {dimension_numbers = #tpu.dot_dimension_numbers<[1], [0], [0], [1], [0, 0, 1, 1], [], []>} : vector<2x32xf32>, vector<32x16xf32>, vector<2x16xf32> -> vector<2x16xf32>
    %c0_5 = arith.constant 0 : index
    %c0_6 = arith.constant 0 : index
    %16 = vector.load %arg24[%c0_5, %c0_6] : memref<2x16xf32, #tpu.memory_space<vmem>>, vector<2x16xf32>
    %c0_7 = arith.constant 0 : index
    %c0_8 = arith.constant 0 : index
    %17 = vector.load %arg25[%c0_7, %c0_8] : memref<2x16xf32, #tpu.memory_space<vmem>>, vector<2x16xf32>
    %c0_9 = arith.constant 0 : index
    %c0_10 = arith.constant 0 : index
    %18 = vector.load %arg26[%c0_9, %c0_10] : memref<2x8xf32, #tpu.memory_space<vmem>>, vector<2x8xf32>
    %c0_11 = arith.constant 0 : index
    %c0_12 = arith.constant 0 : index
    %c0_13 = arith.constant 0 : index
    %19 = vector.load %arg3[%c0_11, %c0_12, %c0_13] : memref<2x8x32xf32, #tpu.memory_space<vmem>>, vector<2x8x32xf32>
    %c0_14 = arith.constant 0 : index
    %c0_15 = arith.constant 0 : index
    %20 = vector.load %arg5[%c0_14, %c0_15] : memref<2x8xf32, #tpu.memory_space<vmem>>, vector<2x8xf32>
    %21 = vector.shape_cast %19 : vector<2x8x32xf32> to vector<16x32xf32>
    %c0_16 = arith.constant 0 : index
    %c0_17 = arith.constant 0 : index
    %22 = vector.load %arg9[%c0_16, %c0_17] : memref<32x32xf32, #tpu.memory_space<vmem>>, vector<32x32xf32>
    %cst_18 = arith.constant dense<0.000000e+00> : vector<16x32xf32>
    %23 = tpu.matmul %21, %22, %cst_18 {dimension_numbers = #tpu.dot_dimension_numbers<[1], [0], [0], [1], [0, 0, 1, 1], [], []>} : vector<16x32xf32>, vector<32x32xf32>, vector<16x32xf32> -> vector<16x32xf32>
    %24 = vector.shape_cast %23 : vector<16x32xf32> to vector<2x8x32xf32>
    %c0_19 = arith.constant 0 : index
    %c0_20 = arith.constant 0 : index
    %25 = vector.load %arg10[%c0_19, %c0_20] : memref<32x32xf32, #tpu.memory_space<vmem>>, vector<16x32xf32>
    %cst_21 = arith.constant dense<0.000000e+00> : vector<2x32xf32>
    %26 = tpu.matmul %16, %25, %cst_21 {dimension_numbers = #tpu.dot_dimension_numbers<[1], [0], [0], [1], [0, 0, 1, 1], [], []>} : vector<2x16xf32>, vector<16x32xf32>, vector<2x32xf32> -> vector<2x32xf32>
    %c16 = arith.constant 16 : index
    %c0_22 = arith.constant 0 : index
    %27 = vector.load %arg10[%c16, %c0_22] : memref<32x32xf32, #tpu.memory_space<vmem>>, vector<16x32xf32>
    %cst_23 = arith.constant dense<0.000000e+00> : vector<2x32xf32>
    %28 = tpu.matmul %17, %27, %cst_23 {dimension_numbers = #tpu.dot_dimension_numbers<[1], [0], [0], [1], [0, 0, 1, 1], [], []>} : vector<2x16xf32>, vector<16x32xf32>, vector<2x32xf32> -> vector<2x32xf32>
    %29 = arith.addf %26, %28 : vector<2x32xf32>
    %c0_24 = arith.constant 0 : index
    %c0_25 = arith.constant 0 : index
    %30 = vector.load %arg11[%c0_24, %c0_25] : memref<1x32xf32, #tpu.memory_space<vmem>>, vector<1x32xf32>
    %31 = vector.broadcast %30 : vector<1x32xf32> to vector<2x32xf32>
    %32 = arith.addf %29, %31 : vector<2x32xf32>
    %33 = vector.shape_cast %18 : vector<2x8xf32> to vector<2x8x1xf32>
    %c0_26 = arith.constant 0 : index
    %c0_27 = arith.constant 0 : index
    %34 = vector.load %arg12[%c0_26, %c0_27] : memref<1x32xf32, #tpu.memory_space<vmem>>, vector<1x32xf32>
    %35 = vector.shape_cast %34 : vector<1x32xf32> to vector<1x1x32xf32>
    %36 = vector.broadcast %33 : vector<2x8x1xf32> to vector<2x8x32xf32>
    %37 = vector.broadcast %35 : vector<1x1x32xf32> to vector<2x8x32xf32>
    %38 = arith.mulf %36, %37 : vector<2x8x32xf32>
    %39 = vector.shape_cast %32 : vector<2x32xf32> to vector<2x1x32xf32>
    %40 = vector.broadcast %39 : vector<2x1x32xf32> to vector<2x8x32xf32>
    %41 = arith.addf %24, %40 : vector<2x8x32xf32>
    %42 = arith.addf %41, %38 : vector<2x8x32xf32>
    %43 = math.tanh %42 : vector<2x8x32xf32>
    %c0_28 = arith.constant 0 : index
    %c0_29 = arith.constant 0 : index
    %44 = vector.load %arg13[%c0_28, %c0_29] : memref<1x32xf32, #tpu.memory_space<vmem>>, vector<1x32xf32>
    %45 = vector.shape_cast %44 : vector<1x32xf32> to vector<1x1x32xf32>
    %46 = vector.broadcast %45 : vector<1x1x32xf32> to vector<2x8x32xf32>
    %47 = arith.mulf %43, %46 : vector<2x8x32xf32>
    %cst_30 = arith.constant dense<0.000000e+00> : vector<2x8xf32>
    %48 = vector.multi_reduction <add>, %47, %cst_30 [2] : vector<2x8x32xf32> to vector<2x8xf32>
    %cst_31 = arith.constant dense<0xFF800000> : vector<2xf32>
    %49 = vector.multi_reduction <maximumf>, %48, %cst_31 [1] : vector<2x8xf32> to vector<2xf32>
    %50 = vector.shape_cast %49 : vector<2xf32> to vector<2x1xf32>
    %51 = vector.broadcast %50 : vector<2x1xf32> to vector<2x8xf32>
    %52 = arith.subf %48, %51 : vector<2x8xf32>
    %53 = math.exp %52 : vector<2x8xf32>
    %cst_32 = arith.constant dense<0.000000e+00> : vector<2xf32>
    %54 = vector.multi_reduction <add>, %53, %cst_32 [1] : vector<2x8xf32> to vector<2xf32>
    %55 = vector.shape_cast %54 : vector<2xf32> to vector<2x1xf32>
    %56 = vector.broadcast %55 : vector<2x1xf32> to vector<2x8xf32>
    %57 = arith.divf %53, %56 : vector<2x8xf32>
    %58 = arith.mulf %57, %20 : vector<2x8xf32>
    %cst_33 = arith.constant dense<0.000000e+00> : vector<2xf32>
    %59 = vector.multi_reduction <add>, %58, %cst_33 [1] : vector<2x8xf32> to vector<2xf32>
    %60 = vector.shape_cast %59 : vector<2xf32> to vector<2x1xf32>
    %61 = vector.broadcast %60 : vector<2x1xf32> to vector<2x8xf32>
    %62 = arith.divf %58, %61 : vector<2x8xf32>
    %63 = vector.shape_cast %62 : vector<2x8xf32> to vector<2x8x1xf32>
    %64 = vector.broadcast %63 : vector<2x8x1xf32> to vector<2x8x32xf32>
    %65 = arith.mulf %64, %19 : vector<2x8x32xf32>
    %cst_34 = arith.constant dense<0.000000e+00> : vector<2x32xf32>
    %66 = vector.multi_reduction <add>, %65, %cst_34 [1] : vector<2x8x32xf32> to vector<2x32xf32>
    %67 = arith.addf %18, %62 : vector<2x8xf32>
    %c0_35 = arith.constant 0 : index
    %c0_36 = arith.constant 0 : index
    %68 = vector.load %arg26[%c0_35, %c0_36] : memref<2x8xf32, #tpu.memory_space<vmem>>, vector<2x8xf32>
    tpu.vector_store %arg26[%c0_35, %c0_36], %67 {strides = array<i32>} : memref<2x8xf32, #tpu.memory_space<vmem>>, vector<2x8xf32>,
    %c0_37 = arith.constant 0 : index
    %c0_38 = arith.constant 0 : index
    %69 = vector.load %arg14[%c0_37, %c0_38] : memref<16x64xf32, #tpu.memory_space<vmem>>, vector<16x64xf32>
    %cst_39 = arith.constant dense<0.000000e+00> : vector<2x64xf32>
    %70 = tpu.matmul %15, %69, %cst_39 {dimension_numbers = #tpu.dot_dimension_numbers<[1], [0], [0], [1], [0, 0, 1, 1], [], []>} : vector<2x16xf32>, vector<16x64xf32>, vector<2x64xf32> -> vector<2x64xf32>
    %c0_40 = arith.constant 0 : index
    %c0_41 = arith.constant 0 : index
    %71 = vector.load %arg15[%c0_40, %c0_41] : memref<16x64xf32, #tpu.memory_space<vmem>>, vector<16x64xf32>
    %cst_42 = arith.constant dense<0.000000e+00> : vector<2x64xf32>
    %72 = tpu.matmul %16, %71, %cst_42 {dimension_numbers = #tpu.dot_dimension_numbers<[1], [0], [0], [1], [0, 0, 1, 1], [], []>} : vector<2x16xf32>, vector<16x64xf32>, vector<2x64xf32> -> vector<2x64xf32>
    %73 = arith.addf %70, %72 : vector<2x64xf32>
    %c0_43 = arith.constant 0 : index
    %c0_44 = arith.constant 0 : index
    %74 = vector.load %arg16[%c0_43, %c0_44] : memref<1x64xf32, #tpu.memory_space<vmem>>, vector<1x64xf32>
    %75 = vector.broadcast %74 : vector<1x64xf32> to vector<2x64xf32>
    %76 = arith.addf %73, %75 : vector<2x64xf32>
    %77 = vector.extract_strided_slice %76 {offsets = [0, 0], sizes = [2, 16], strides = [1, 1]} : vector<2x64xf32> to vector<2x16xf32>
    %78 = arith.negf %77 : vector<2x16xf32>
    %79 = math.exp %78 : vector<2x16xf32>
    %cst_45 = arith.constant 1.000000e+00 : f32
    %80 = vector.broadcast %cst_45 : f32 to vector<2x16xf32>
    %81 = arith.addf %80, %79 : vector<2x16xf32>
    %82 = arith.divf %80, %81 : vector<2x16xf32>
    %83 = vector.extract_strided_slice %76 {offsets = [0, 16], sizes = [2, 16], strides = [1, 1]} : vector<2x64xf32> to vector<2x16xf32>
    %84 = arith.negf %83 : vector<2x16xf32>
    %85 = math.exp %84 : vector<2x16xf32>
    %cst_46 = arith.constant 1.000000e+00 : f32
    %86 = vector.broadcast %cst_46 : f32 to vector<2x16xf32>
    %87 = arith.addf %86, %85 : vector<2x16xf32>
    %88 = arith.divf %86, %87 : vector<2x16xf32>
    %89 = vector.extract_strided_slice %76 {offsets = [0, 32], sizes = [2, 16], strides = [1, 1]} : vector<2x64xf32> to vector<2x16xf32>
    %90 = math.tanh %89 : vector<2x16xf32>
    %91 = vector.extract_strided_slice %76 {offsets = [0, 48], sizes = [2, 16], strides = [1, 1]} : vector<2x64xf32> to vector<2x16xf32>
    %92 = arith.negf %91 : vector<2x16xf32>
    %93 = math.exp %92 : vector<2x16xf32>
    %cst_47 = arith.constant 1.000000e+00 : f32
    %94 = vector.broadcast %cst_47 : f32 to vector<2x16xf32>
    %95 = arith.addf %94, %93 : vector<2x16xf32>
    %96 = arith.divf %94, %95 : vector<2x16xf32>
    %97 = arith.mulf %88, %17 : vector<2x16xf32>
    %98 = arith.mulf %82, %90 : vector<2x16xf32>
    %99 = arith.addf %97, %98 : vector<2x16xf32>
    %100 = math.tanh %99 : vector<2x16xf32>
    %101 = arith.mulf %96, %100 : vector<2x16xf32>
    %c0_48 = arith.constant 0 : index
    %c0_49 = arith.constant 0 : index
    %102 = vector.load %arg24[%c0_48, %c0_49] : memref<2x16xf32, #tpu.memory_space<vmem>>, vector<2x16xf32>
    tpu.vector_store %arg24[%c0_48, %c0_49], %101 {strides = array<i32>} : memref<2x16xf32, #tpu.memory_space<vmem>>, vector<2x16xf32>,
    %c0_50 = arith.constant 0 : index
    %c0_51 = arith.constant 0 : index
    %103 = vector.load %arg25[%c0_50, %c0_51] : memref<2x16xf32, #tpu.memory_space<vmem>>, vector<2x16xf32>
    tpu.vector_store %arg25[%c0_50, %c0_51], %99 {strides = array<i32>} : memref<2x16xf32, #tpu.memory_space<vmem>>, vector<2x16xf32>,
    %c0_52 = arith.constant 0 : index
    %c0_53 = arith.constant 0 : index
    %104 = vector.load %arg17[%c0_52, %c0_53] : memref<48x16xf32, #tpu.memory_space<vmem>>, vector<16x16xf32>
    %cst_54 = arith.constant dense<0.000000e+00> : vector<2x16xf32>
    %105 = tpu.matmul %101, %104, %cst_54 {dimension_numbers = #tpu.dot_dimension_numbers<[1], [0], [0], [1], [0, 0, 1, 1], [], []>} : vector<2x16xf32>, vector<16x16xf32>, vector<2x16xf32> -> vector<2x16xf32>
    %c16_55 = arith.constant 16 : index
    %c0_56 = arith.constant 0 : index
    %106 = vector.load %arg17[%c16_55, %c0_56] : memref<48x16xf32, #tpu.memory_space<vmem>>, vector<32x16xf32>
    %cst_57 = arith.constant dense<0.000000e+00> : vector<2x16xf32>
    %107 = tpu.matmul %66, %106, %cst_57 {dimension_numbers = #tpu.dot_dimension_numbers<[1], [0], [0], [1], [0, 0, 1, 1], [], []>} : vector<2x32xf32>, vector<32x16xf32>, vector<2x16xf32> -> vector<2x16xf32>
    %108 = arith.addf %105, %107 : vector<2x16xf32>
    %c0_58 = arith.constant 0 : index
    %c0_59 = arith.constant 0 : index
    %109 = vector.load %arg18[%c0_58, %c0_59] : memref<1x16xf32, #tpu.memory_space<vmem>>, vector<1x16xf32>
    %110 = vector.broadcast %109 : vector<1x16xf32> to vector<2x16xf32>
    %111 = arith.addf %108, %110 : vector<2x16xf32>
    %c0_60 = arith.constant 0 : index
    %c0_61 = arith.constant 0 : index
    %112 = vector.load %arg19[%c0_60, %c0_61] : memref<16x32xf32, #tpu.memory_space<vmem>>, vector<16x32xf32>
    %cst_62 = arith.constant dense<0.000000e+00> : vector<2x32xf32>
    %113 = tpu.matmul %111, %112, %cst_62 {dimension_numbers = #tpu.dot_dimension_numbers<[1], [0], [0], [1], [0, 0, 1, 1], [], []>} : vector<2x16xf32>, vector<16x32xf32>, vector<2x32xf32> -> vector<2x32xf32>
    %c0_63 = arith.constant 0 : index
    %c0_64 = arith.constant 0 : index
    %114 = vector.load %arg20[%c0_63, %c0_64] : memref<1x32xf32, #tpu.memory_space<vmem>>, vector<1x32xf32>
    %115 = vector.broadcast %114 : vector<1x32xf32> to vector<2x32xf32>
    %116 = arith.addf %113, %115 : vector<2x32xf32>
    %cst_65 = arith.constant dense<0xFF800000> : vector<2xf32>
    %117 = vector.multi_reduction <maximumf>, %116, %cst_65 [1] : vector<2x32xf32> to vector<2xf32>
    %118 = vector.shape_cast %117 : vector<2xf32> to vector<2x1xf32>
    %119 = vector.broadcast %118 : vector<2x1xf32> to vector<2x32xf32>
    %120 = arith.subf %116, %119 : vector<2x32xf32>
    %121 = math.exp %120 : vector<2x32xf32>
    %cst_66 = arith.constant dense<0.000000e+00> : vector<2xf32>
    %122 = vector.multi_reduction <add>, %121, %cst_66 [1] : vector<2x32xf32> to vector<2xf32>
    %123 = vector.shape_cast %122 : vector<2xf32> to vector<2x1xf32>
    %124 = vector.broadcast %123 : vector<2x1xf32> to vector<2x32xf32>
    %125 = arith.divf %121, %124 : vector<2x32xf32>
    %c0_67 = arith.constant 0 : index
    %c0_68 = arith.constant 0 : index
    %126 = vector.load %arg21[%c0_67, %c0_68] : memref<80x1xf32, #tpu.memory_space<vmem>>, vector<32x1xf32>
    %cst_69 = arith.constant dense<0.000000e+00> : vector<2x1xf32>
    %127 = tpu.matmul %66, %126, %cst_69 {dimension_numbers = #tpu.dot_dimension_numbers<[1], [0], [0], [1], [0, 0, 1, 1], [], []>} : vector<2x32xf32>, vector<32x1xf32>, vector<2x1xf32> -> vector<2x1xf32>
    %c32 = arith.constant 32 : index
    %c0_70 = arith.constant 0 : index
    %128 = vector.load %arg21[%c32, %c0_70] : memref<80x1xf32, #tpu.memory_space<vmem>>, vector<16x1xf32>
    %cst_71 = arith.constant dense<0.000000e+00> : vector<2x1xf32>
    %129 = tpu.matmul %101, %128, %cst_71 {dimension_numbers = #tpu.dot_dimension_numbers<[1], [0], [0], [1], [0, 0, 1, 1], [], []>} : vector<2x16xf32>, vector<16x1xf32>, vector<2x1xf32> -> vector<2x1xf32>
    %130 = arith.addf %127, %129 : vector<2x1xf32>
    %c48 = arith.constant 48 : index
    %c0_72 = arith.constant 0 : index
    %131 = vector.load %arg21[%c48, %c0_72] : memref<80x1xf32, #tpu.memory_space<vmem>>, vector<16x1xf32>
    %cst_73 = arith.constant dense<0.000000e+00> : vector<2x1xf32>
    %132 = tpu.matmul %99, %131, %cst_73 {dimension_numbers = #tpu.dot_dimension_numbers<[1], [0], [0], [1], [0, 0, 1, 1], [], []>} : vector<2x16xf32>, vector<16x1xf32>, vector<2x1xf32> -> vector<2x1xf32>
    %133 = arith.addf %130, %132 : vector<2x1xf32>
    %c64 = arith.constant 64 : index
    %c0_74 = arith.constant 0 : index
    %134 = vector.load %arg21[%c64, %c0_74] : memref<80x1xf32, #tpu.memory_space<vmem>>, vector<16x1xf32>
    %cst_75 = arith.constant dense<0.000000e+00> : vector<2x1xf32>
    %135 = tpu.matmul %15, %134, %cst_75 {dimension_numbers = #tpu.dot_dimension_numbers<[1], [0], [0], [1], [0, 0, 1, 1], [], []>} : vector<2x16xf32>, vector<16x1xf32>, vector<2x1xf32> -> vector<2x1xf32>
    %136 = arith.addf %133, %135 : vector<2x1xf32>
    %c0_76 = arith.constant 0 : index
    %c0_77 = arith.constant 0 : index
    %137 = vector.load %arg22[%c0_76, %c0_77] : memref<1x1xf32, #tpu.memory_space<vmem>>, vector<1x1xf32>
    %138 = vector.broadcast %137 : vector<1x1xf32> to vector<2x1xf32>
    %139 = arith.addf %136, %138 : vector<2x1xf32>
    %140 = arith.negf %139 : vector<2x1xf32>
    %141 = math.exp %140 : vector<2x1xf32>
    %cst_78 = arith.constant 1.000000e+00 : f32
    %142 = vector.broadcast %cst_78 : f32 to vector<2x1xf32>
    %143 = arith.addf %142, %141 : vector<2x1xf32>
    %144 = arith.divf %142, %143 : vector<2x1xf32>
    %cst_79 = arith.constant 1.000000e-03 : f32
    %cst_80 = arith.constant 9.990000e-01 : f32
    %145 = vector.broadcast %cst_79 : f32 to vector<2x1xf32>
    %146 = arith.maximumf %145, %144 : vector<2x1xf32>
    %147 = vector.broadcast %cst_80 : f32 to vector<2x1xf32>
    %148 = arith.minimumf %147, %146 : vector<2x1xf32>
    %149 = tpu.iota {dimensions = array<i32: 0>} : vector<32x34xi32>
    %150 = tpu.iota {dimensions = array<i32: 1>} : vector<32x34xi32>
    %151 = arith.cmpi eq, %149, %150 : vector<32x34xi32>
    %152 = arith.extui %151 : vector<32x34xi1> to vector<32x34xi32>
    %153 = arith.sitofp %152 : vector<32x34xi32> to vector<32x34xf32>
    %154 = vector.broadcast %148 : vector<2x1xf32> to vector<2x32xf32>
    %155 = arith.mulf %154, %125 : vector<2x32xf32>
    %cst_81 = arith.constant dense<0.000000e+00> : vector<2x34xf32>
    %156 = tpu.matmul %155, %153, %cst_81 {dimension_numbers = #tpu.dot_dimension_numbers<[1], [0], [0], [1], [0, 0, 1, 1], [], []>} : vector<2x32xf32>, vector<32x34xf32>, vector<2x34xf32> -> vector<2x34xf32>
    %cst_82 = arith.constant 1.000000e+00 : f32
    %157 = vector.broadcast %cst_82 : f32 to vector<2x1xf32>
    %158 = arith.subf %157, %148 : vector<2x1xf32>
    %159 = vector.broadcast %158 : vector<2x1xf32> to vector<2x8xf32>
    %160 = arith.mulf %159, %62 : vector<2x8xf32>
    %c0_83 = arith.constant 0 : index
    %c0_84 = arith.constant 0 : index
    %161 = vector.load %arg4[%c0_83, %c0_84] : memref<2x8xi32, #tpu.memory_space<vmem>>, vector<2x8xi32>
    %cst_85 = arith.constant 0.000000e+00 : f32
    %162 = vector.broadcast %cst_85 : f32 to vector<2x34xf32>
    %163 = vector.shape_cast %161 : vector<2x8xi32> to vector<2x8x1xi32>
    %164 = tpu.iota {dimensions = array<i32: 2>} : vector<2x8x34xi32>
    %165 = vector.broadcast %163 : vector<2x8x1xi32> to vector<2x8x34xi32>
    %166 = arith.cmpi eq, %165, %164 : vector<2x8x34xi32>
    %167 = arith.extui %166 : vector<2x8x34xi1> to vector<2x8x34xi32>
    %168 = arith.sitofp %167 : vector<2x8x34xi32> to vector<2x8x34xf32>
    %169 = vector.shape_cast %160 : vector<2x8xf32> to vector<2x8x1xf32>
    %170 = vector.broadcast %169 : vector<2x8x1xf32> to vector<2x8x34xf32>
    %171 = arith.mulf %170, %168 : vector<2x8x34xf32>
    %cst_86 = arith.constant dense<0.000000e+00> : vector<2x34xf32>
    %172 = vector.multi_reduction <add>, %171, %cst_86 [1] : vector<2x8x34xf32> to vector<2x34xf32>
    %173 = arith.addf %162, %172 : vector<2x34xf32>
    %174 = arith.addf %156, %173 : vector<2x34xf32>
    %c0_87 = arith.constant 0 : index
    %c0_88 = arith.constant 0 : index
    %c0_89 = arith.constant 0 : index
    %175 = vector.load %arg2[%c0_87, %c0_88, %c0_89] : memref<1x2x1xi32, #tpu.memory_space<vmem>>, vector<1x2x1xi32>
    %176 = vector.shape_cast %175 : vector<1x2x1xi32> to vector<2x1xi32>
    %177 = tpu.iota {dimensions = array<i32: 1>} : vector<2x34xi32>
    %178 = vector.broadcast %176 : vector<2x1xi32> to vector<2x34xi32>
    %179 = arith.cmpi eq, %178, %177 : vector<2x34xi32>
    %180 = arith.extui %179 : vector<2x34xi1> to vector<2x34xi32>
    %181 = arith.sitofp %180 : vector<2x34xi32> to vector<2x34xf32>
    %182 = arith.mulf %174, %181 : vector<2x34xf32>
    %cst_90 = arith.constant dense<0.000000e+00> : vector<2xf32>
    %183 = vector.multi_reduction <add>, %182, %cst_90 [1] : vector<2x34xf32> to vector<2xf32>
    %184 = vector.shape_cast %183 : vector<2xf32> to vector<2x1xf32>
    %c0_i32_91 = arith.constant 0 : i32
    %185 = vector.broadcast %c0_i32_91 : i32 to vector<2x1xi32>
    %186 = arith.cmpi ne, %176, %185 : vector<2x1xi32>
    %187 = arith.extui %186 : vector<2x1xi1> to vector<2x1xi32>
    %188 = arith.sitofp %187 : vector<2x1xi32> to vector<2x1xf32>
    %189 = arith.minimumf %62, %67 : vector<2x8xf32>
    %cst_92 = arith.constant dense<0.000000e+00> : vector<2xf32>
    %190 = vector.multi_reduction <add>, %189, %cst_92 [1] : vector<2x8xf32> to vector<2xf32>
    %191 = vector.shape_cast %190 : vector<2xf32> to vector<2x1xf32>
    %cst_93 = arith.constant 9.99999996E-13 : f32
    %192 = vector.broadcast %cst_93 : f32 to vector<2x1xf32>
    %193 = arith.addf %184, %192 : vector<2x1xf32>
    %194 = math.log %193 : vector<2x1xf32>
    %cst_94 = arith.constant 0.000000e+00 : f32
    %195 = vector.broadcast %cst_94 : f32 to vector<2x1xf32>
    %196 = arith.subf %195, %194 : vector<2x1xf32>
    %cst_95 = arith.constant 1.000000e+00 : f32
    %197 = vector.broadcast %cst_95 : f32 to vector<2x1xf32>
    %198 = arith.mulf %197, %191 : vector<2x1xf32>
    %199 = arith.addf %196, %198 : vector<2x1xf32>
    %200 = arith.mulf %199, %188 : vector<2x1xf32>
    %c0_96 = arith.constant 0 : index
    %c0_97 = arith.constant 0 : index
    %201 = vector.load %arg23[%c0_96, %c0_97] : memref<2x1xf32, #tpu.memory_space<vmem>>, vector<2x1xf32>
    %202 = arith.addf %201, %200 : vector<2x1xf32>
    %c0_98 = arith.constant 0 : index
    %c0_99 = arith.constant 0 : index
    %203 = vector.load %arg23[%c0_98, %c0_99] : memref<2x1xf32, #tpu.memory_space<vmem>>, vector<2x1xf32>
    tpu.vector_store %arg23[%c0_98, %c0_99], %202 {strides = array<i32>} : memref<2x1xf32, #tpu.memory_space<vmem>>, vector<2x1xf32>,
    return
  }
  func.func @transform_0(%arg0: i32) -> (i32, i32, i32) {
    %c0_i32 = arith.constant 0 : i32
    %c0_i32_0 = arith.constant 0 : i32
    %c0_i32_1 = arith.constant 0 : i32
    return %arg0, %c0_i32, %c0_i32_0 : i32, i32, i32
  }
  func.func @transform_1(%arg0: i32) -> (i32, i32, i32) {
    %c0_i32 = arith.constant 0 : i32
    %c0_i32_0 = arith.constant 0 : i32
    %c0_i32_1 = arith.constant 0 : i32
    return %arg0, %c0_i32, %c0_i32_0 : i32, i32, i32
  }
  func.func @transform_2(%arg0: i32) -> (i32, i32, i32) {
    %c0_i32 = arith.constant 0 : i32
    %c0_i32_0 = arith.constant 0 : i32
    %c0_i32_1 = arith.constant 0 : i32
    %c0_i32_2 = arith.constant 0 : i32
    return %c0_i32, %c0_i32_0, %c0_i32_1 : i32, i32, i32
  }
  func.func @transform_3(%arg0: i32) -> (i32, i32) {
    %c0_i32 = arith.constant 0 : i32
    %c0_i32_0 = arith.constant 0 : i32
    %c0_i32_1 = arith.constant 0 : i32
    return %c0_i32, %c0_i32_0 : i32, i32
  }
  func.func @transform_4(%arg0: i32) -> (i32, i32) {
    %c0_i32 = arith.constant 0 : i32
    %c0_i32_0 = arith.constant 0 : i32
    %c0_i32_1 = arith.constant 0 : i32
    return %c0_i32, %c0_i32_0 : i32, i32
  }
  func.func @transform_5(%arg0: i32) -> (i32, i32) {
    %c0_i32 = arith.constant 0 : i32
    %c0_i32_0 = arith.constant 0 : i32
    %c0_i32_1 = arith.constant 0 : i32
    return %c0_i32, %c0_i32_0 : i32, i32
  }
  func.func @transform_6(%arg0: i32) -> (i32, i32) {
    %c0_i32 = arith.constant 0 : i32
    %c0_i32_0 = arith.constant 0 : i32
    %c0_i32_1 = arith.constant 0 : i32
    return %c0_i32, %c0_i32_0 : i32, i32
  }
  func.func @transform_7(%arg0: i32) -> (i32, i32) {
    %c0_i32 = arith.constant 0 : i32
    %c0_i32_0 = arith.constant 0 : i32
    %c0_i32_1 = arith.constant 0 : i32
    return %c0_i32, %c0_i32_0 : i32, i32
  }
  func.func @transform_8(%arg0: i32) -> (i32, i32) {
    %c0_i32 = arith.constant 0 : i32
    %c0_i32_0 = arith.constant 0 : i32
    %c0_i32_1 = arith.constant 0 : i32
    return %c0_i32, %c0_i32_0 : i32, i32
  }
  func.func @transform_9(%arg0: i32) -> (i32, i32) {
    %c0_i32 = arith.constant 0 : i32
    %c0_i32_0 = arith.constant 0 : i32
    %c0_i32_1 = arith.constant 0 : i32
    return %c0_i32, %c0_i32_0 : i32, i32
  }
  func.func @transform_10(%arg0: i32) -> (i32, i32) {
    %c0_i32 = arith.constant 0 : i32
    %c0_i32_0 = arith.constant 0 : i32
    %c0_i32_1 = arith.constant 0 : i32
    return %c0_i32, %c0_i32_0 : i32, i32
  }
  func.func @transform_11(%arg0: i32) -> (i32, i32) {
    %c0_i32 = arith.constant 0 : i32
    %c0_i32_0 = arith.constant 0 : i32
    %c0_i32_1 = arith.constant 0 : i32
    return %c0_i32, %c0_i32_0 : i32, i32
  }
  func.func @transform_12(%arg0: i32) -> (i32, i32) {
    %c0_i32 = arith.constant 0 : i32
    %c0_i32_0 = arith.constant 0 : i32
    %c0_i32_1 = arith.constant 0 : i32
    return %c0_i32, %c0_i32_0 : i32, i32
  }
  func.func @transform_13(%arg0: i32) -> (i32, i32) {
    %c0_i32 = arith.constant 0 : i32
    %c0_i32_0 = arith.constant 0 : i32
    %c0_i32_1 = arith.constant 0 : i32
    return %c0_i32, %c0_i32_0 : i32, i32
  }
  func.func @transform_14(%arg0: i32) -> (i32, i32) {
    %c0_i32 = arith.constant 0 : i32
    %c0_i32_0 = arith.constant 0 : i32
    %c0_i32_1 = arith.constant 0 : i32
    return %c0_i32, %c0_i32_0 : i32, i32
  }
  func.func @transform_15(%arg0: i32) -> (i32, i32) {
    %c0_i32 = arith.constant 0 : i32
    %c0_i32_0 = arith.constant 0 : i32
    %c0_i32_1 = arith.constant 0 : i32
    return %c0_i32, %c0_i32_0 : i32, i32
  }
  func.func @transform_16(%arg0: i32) -> (i32, i32) {
    %c0_i32 = arith.constant 0 : i32
    %c0_i32_0 = arith.constant 0 : i32
    %c0_i32_1 = arith.constant 0 : i32
    return %c0_i32, %c0_i32_0 : i32, i32
  }
  func.func @transform_17(%arg0: i32) -> (i32, i32) {
    %c0_i32 = arith.constant 0 : i32
    %c0_i32_0 = arith.constant 0 : i32
    %c0_i32_1 = arith.constant 0 : i32
    return %c0_i32, %c0_i32_0 : i32, i32
  }
  func.func @transform_18(%arg0: i32) -> (i32, i32) {
    %c0_i32 = arith.constant 0 : i32
    %c0_i32_0 = arith.constant 0 : i32
    %c0_i32_1 = arith.constant 0 : i32
    return %c0_i32, %c0_i32_0 : i32, i32
  }
  func.func @transform_19(%arg0: i32) -> (i32, i32) {
    %c0_i32 = arith.constant 0 : i32
    %c0_i32_0 = arith.constant 0 : i32
    %c0_i32_1 = arith.constant 0 : i32
    return %c0_i32, %c0_i32_0 : i32, i32
  }
  func.func @transform_20(%arg0: i32) -> (i32, i32) {
    %c0_i32 = arith.constant 0 : i32
    %c0_i32_0 = arith.constant 0 : i32
    %c0_i32_1 = arith.constant 0 : i32
    return %c0_i32, %c0_i32_0 : i32, i32
  }
  func.func @transform_21(%arg0: i32) -> (i32, i32) {
    %c0_i32 = arith.constant 0 : i32
    %c0_i32_0 = arith.constant 0 : i32
    %c0_i32_1 = arith.constant 0 : i32
    return %c0_i32, %c0_i32_0 : i32, i32
  }
  func.func @transform_22(%arg0: i32) -> (i32, i32) {
    %c0_i32 = arith.constant 0 : i32
    %c0_i32_0 = arith.constant 0 : i32
    %c0_i32_1 = arith.constant 0 : i32
    return %c0_i32, %c0_i32_0 : i32, i32
  }
}

</mosaic_0001>

<bundles_post_ra>
// kernel: pgn_forward.2
= control target key start
LH: loop header
LB: loop body
LE: loop exit
PB: predicated region body
PF: predicated region fallthrough
CT: control target
= control target key end

     0   :  { %s865_s21 = smov 0   ;;  %s867_s22 = smov 0   ;;  %s951_s0 = inlined_call_operand.vmem [shape: f32[8,2,16], index: 0, kind: input, shape index: {}]   ;;  %s952_s1 = inlined_call_operand.vmem [shape: f32[2,16,64], index: 1, kind: input, shape index: {}]   ;;  %s953_s2 = inlined_call_operand.vmem [shape: f32[2,16,64], index: 2, kind: input, shape index: {}]   ;;  %s954_s3 = inlined_call_operand.vmem [shape: f32[2,1,64], index: 3, kind: input, shape index: {}]   ;;  %s955_s4 = inlined_call_operand.vmem [shape: f32[2,8,2,16], index: 4, kind: output, shape index: {0}]   ;;  %s956_s5 = inlined_call_operand.vmem [shape: f32[2,2,16], index: 5, kind: output, shape index: {1}]   ;;  %s957_s6 = inlined_call_operand.vmem [shape: f32[2,2,16], index: 6, kind: output, shape index: {2}]  }
   0x1   :  { %958 = sst [smem:[#allocation6_spill]] %s952_s1  ;;  %s869_s23 = smov 0  }
   0x2   :  { %s871_s24 = smov 0   ;;  %s873_s25 = smov 0  }
   0x3 LB: > { %s26_s26 = sadd.s32 1, %s814_s23  ;;  %s29_s27 = sadd.s32 1, %s818_s24  ;;  %s822_s25 = sphi %s873_s25, %s17_s25   ;;  %s818_s24 = sphi %s871_s24, %s967_s24   ;;  %s814_s23 = sphi %s869_s23, %s966_s23   ;;  %s810_s22 = sphi %s867_s22, %s965_s22   ;;  %s806_s21 = sphi %s865_s21, %s964_s21  }
   0x4   : > { %p27_p0 = scmp.ge.s32.totalorder %s26_s26, 8  ;;  %p709_p1 = scmp.ge.s32.totalorder %s822_s25, 1 }
   0x5   : > { %p282_p2 = scmp.lt.s32.totalorder %s822_s25, 17 }
   0x6   : > { %s969_s26 = smov (%p27_p0, %s26_s26), 0  ;;  %s971_s27 = smov (!%p27_p0, %s29_s27), %s818_s24 }
   0x7   : > { %959 = sst [smem:[#allocation4_spill]] %s969_s26  ;;  %p283_p3 = pnand %p709_p1, %p282_p2 }
   0x8   : > { %p31_p4 = scmp.ge.s32.totalorder %s971_s27, 2  ;;  %s710_s28 = sshll.u32 (!%p283_p3), %s806_s21, 1 }
   0x9   : > { %286 = sbr.rel (%p283_p3) target bundleno = 632 (0x278), region = 36  ;;  %p355_p5 = scmp.lt.s32.totalorder (!%p283_p3), %s810_s22, 1 }
   0xa   : > { %s973_s27 = smov (%p31_p4, %s971_s27), 0  ;;  %s344_s29 = ssub.s32 (!%p283_p3), 7, %s710_s28 }
   0xb   : > { %960 = sst [smem:[#allocation5_spill]] %s973_s27  ;;  %s345_s30 = smul.u32 (!%p283_p3), %s810_s22, %s344_s29 }
   0xc   : > { %s961_s1 = sld [smem:[#allocation6_spill]] (!%p283_p3)  ;;  %p721_p7 = scmp.ne.s32.totalorder (!%p283_p3), %s806_s21, 0 }
   0xd   : > { %s346_s7 = sadd.s32 (!%p283_p3), %s806_s21, %s345_s30 }
   0xe   : > { %s975_s22 = smov (!%p355_p5, %s810_s22), 1  ;;  %p347_p6 = scmp.lt.s32.totalorder %s346_s7, 7 }
   0xf   : > { %s727_s8 = sshll.u32 %s975_s22, 4  ;;  %s367_s17 = scalar_lea.vmem %s954_s3, %s975_s22 }
  0x10   : > { %s364_s14 = scalar_lea.vmem %s953_s2, %s727_s8  ;;  %s977_s7 = smov (!%p347_p6, %s346_s7), 7 }
  0x11   : > { %s717_s18 = sshll.u32 %s975_s22, 3  ;;  %s711_s19 = sshll.u32 %s977_s7, 1 }
  0x12   : > { %s359_s11 = scalar_lea.vmem %s961_s1, %s727_s8  ;;  %s377_s20 = sadd.s32 %s717_s18, %s977_s7 }
  0x13   : > { %s350_s30 = scalar_lea.vmem %s951_s0, %s711_s19  ;;  %s718_s27 = sshll.u32 %s377_s20, 1 }
  0x14   : > { %s919_s10 = scalar_lea.vmem %s955_s4, %s718_s27  ;;  %s719_s12 = sshll.u32 %s975_s22, 1 }
  0x15   : > { %s925_s1 = scalar_lea.vmem %s956_s5, %s719_s12  ;;  %s930_s7 = scalar_lea.vmem %s957_s6, %s719_s12 }
  0x16   : > { %395 = sbr.rel (%p721_p7) target bundleno = 30 (0x1e), region = 40 }
  0x1b   : > { %vm396_vm0 = vcmask 123904   ;;  %v824_v0 = vmov 0.0  }
  0x1c   : > { %397 = vst.msk [vmem:[#allocation2] sm:$0x3] %vm396_vm0, %v824_v0 }
  0x1d   : > { %398 = vst.msk [vmem:[#allocation3] sm:$0x3] %vm396_vm0, %v824_v0 }
  0x1e PF: > { %v405_v1 = vld [vmem:[%s364_s14 + $0x8] sm:$0xff]  ;;  %v404_v3 = vld [vmem:[%s364_s14] sm:$0xff]  ;;  %vm406_vm1 = vcmask 130048   ;;  %s825_s21 = smov 96   ;;  %s826_s22 = smov 16   ;;  %vm503_vm6 = vcmask 123904  }
  0x1f   : > { %v403_v2 = vld [vmem:[%s359_s11 + $0x8] sm:$0xff]  ;;  %424 = vmatpush.msra.mxu0 %v405_v1  ;;  %v402_v4 = vld [vmem:[%s359_s11] sm:$0xff]  ;;  %s827_s26 = smov 32   ;;  %s828_s27 = smov 80  }
  0x20   : > { %447 = vmatpush.msra.mxu1 %v403_v2  ;;  %v399_v6 = vld [vmem:[%s350_s30] sm:$0x3]  ;;  %s829_s11 = smov 112  }
  0x21   : > { %425 = vmatpush.msra.mxu0 %v404_v3  ;;  %v775_v7 = vld [vmem:[%s367_s17] ss:$0 sm:$0xff] }
  0x22   : > { %448 = vmatpush.msra.mxu1 %v402_v4 }
  0x23   : > { %v400_v5 = vld [vmem:[#allocation2] sm:$0x3]  ;;  %723 = vmatmul.msk.f32.vlgmr.msra.gmra.mxu1 %vm406_vm1, %v399_v6 }
  0x24   : > { %722 = vmatmul.msk.f32.vlgmr.msra.gmra.mxu0 %vm406_vm1, %v400_v5  ;;  %v401_v13 = vld [vmem:[#allocation3] sm:$0x3] }
  0xa0   : > { %v450_v9 = vpop.f32.mrf.mxu1 }
  0xa1   : > { %v427_v8 = vpop.f32.mrf.mxu0 }
  0xa2   : > { %v451_v10 = vadd.f32 %v450_v9, %v427_v8 }
  0xa4   : > { %v457_v11 = vadd.f32 %v775_v7, %v451_v10 }
  0xa6   : > { %776 = vtanh.f32 %v457_v11  ;;  %v724_v14 = vmul.f32 -1.442695, %v457_v11 }
  0xa8   : > { %778 = vpow2.f32 %v724_v14 }
  0xac   : > { %v777_v12 = vpop.eup %776 }
  0xad   : > { %484 = vrot.lane.b32.xlu0 %v777_v12, %s825_s21 }
  0xae   : > { %v779_v15 = vpop.eup %778 }
  0xaf   : > { %v461_v16 = vadd.f32 1.0, %v779_v15 }
  0xb1   : > { %780 = vrcp.f32 %v461_v16  ;;  %v473_v22 = vand.u32 2147483648, %v461_v16  ;;  %vm467_vm3 = vweird.f32 %v461_v16  ;;  %v471_v23 = vand.u32 2147483647, %v461_v16 }
  0xb3   : > { %v474_v25 = vor.u32 1.1754944e-38, %v473_v22  ;;  %vm472_vm5 = vcmp.eq.f32.partialorder %v471_v23, 8.507059e+37 }
  0xb5   : > { %479 = vrot.lane.b32.xlu0 %v401_v13, %s826_s22 }
  0xb7   : > { %v781_v17 = vpop.eup %780 }
  0xb8   : > { %v463_v18 = vmul.f32 %v781_v17, %v461_v16  ;;  %vm468_vm2 = vweird.f32 %v781_v17 }
  0xb9   : > { %vm469_vm4 = vmor %vm467_vm3, %vm468_vm2 }
  0xba   : > { %v464_v19 = vsub.f32 1.0, %v463_v18 }
  0xbc   : > { %v465_v20 = vmul.f32 %v781_v17, %v464_v19 }
  0xbe   : > { %v466_v21 = vadd.f32 %v781_v17, %v465_v20 }
  0xc0   : > { %v470_v24 = vsel %vm469_vm4, %v781_v17, %v466_v21 }
  0xc1   : > { %v475_v27 = vsel %vm472_vm5, %v474_v25, %v470_v24 }
 0x11f   : > { %v485_v26 = vpop.permute.xlu0 %484 }
 0x120   : > { %v487_v28 = vmul.f32 %v485_v26, %v475_v27 }
 0x122   : > { %489 = vrot.lane.b32.xlu1 %v487_v28, %s826_s22 }
 0x127   : > { %v480_v29 = vpop.permute.xlu0 %479 }
 0x128   : > { %v482_v30 = vmul.f32 %v480_v29, %v475_v27 }
 0x194   : > { %v490_v31 = vpop.permute.xlu1 %489 }
 0x195   : > { %v492_v32 = vadd.f32 %v490_v31, %v482_v30 }
 0x197   : > { %782 = vtanh.f32 %v492_v32 }
 0x19d   : > { %v783_v33 = vpop.eup %782 }
 0x19e   : > { %495 = vrot.lane.b32.xlu1 %v783_v33, %s827_s26 }
 0x210   : > { %v496_v34 = vpop.permute.xlu1 %495 }
 0x211   : > { %v498_v35 = vmul.f32 %v496_v34, %v475_v27 }
 0x213   : > { %500 = vrot.lane.b32.xlu2 %v498_v35, %s828_s27 }
 0x21b   : > { %506 = vrot.lane.b32.xlu2 %v492_v32, %s829_s11 }
 0x26d   : > { %v501_v36 = vpop.permute.xlu2 %500 }
 0x26e   : > { %504 = vst.msk [vmem:[#allocation2] sm:$0x3] %vm503_vm6, %v501_v36 }
 0x26f   : > { %510 = vst.msk [vmem:[%s919_s10] sm:$0x3] %vm503_vm6, %v501_v36 }
 0x270   : > { %511 = vst.msk [vmem:[%s925_s1] sm:$0x3] %vm503_vm6, %v501_v36 }
 0x275   : > { %v507_v37 = vpop.permute.xlu2 %506 }
 0x276   : > { %509 = vst.msk [vmem:[#allocation3] sm:$0x3] %vm503_vm6, %v507_v37 }
 0x277   : > { %512 = vst.msk [vmem:[%s930_s7] sm:$0x3] %vm503_vm6, %v507_v37 }
 0x278 PF: > { %s17_s25 = sadd.s32 1, %s822_s25   ;;  %s962_s14 = sld [smem:[#allocation4_spill]] }
 0x279   : > { %p14_p8 = scmp.ge.s32.totalorder %s17_s25, 18   ;;  %s963_s17 = sld [smem:[#allocation5_spill]] }
 0x27a   : > { %s964_s21 = smov %s814_s23  ;;  %s965_s22 = smov %s818_s24 }
 0x27b   :  { %16 = sbr.rel (!%p14_p8) target bundleno = 3 (0x3), region = 103 }
 0x27e   : > { %s966_s23 = smov %s962_s14 }
 0x27f   : > { %s967_s24 = smov %s963_s17 }

// kernel: pgn_forward.3
= control target key start
LH: loop header
LB: loop body
LE: loop exit
PB: predicated region body
PF: predicated region fallthrough
CT: control target
= control target key end

     0   :  { %s1842_s29 = smov 0   ;;  %s2154_s0 = inlined_call_operand.vmem [shape: s32[4,2,1], index: 0, kind: input, shape index: {}]   ;;  %s2155_s1 = inlined_call_operand.vmem [shape: s32[4,2,1], index: 1, kind: input, shape index: {}]   ;;  %s2156_s2 = inlined_call_operand.vmem [shape: f32[2,8,32], index: 2, kind: input, shape index: {}]   ;;  %s2157_s3 = inlined_call_operand.vmem [shape: s32[2,8], index: 3, kind: input, shape index: {}]   ;;  %s2158_s4 = inlined_call_operand.vmem [shape: f32[2,8], index: 4, kind: input, shape index: {}]   ;;  %s2159_s5 = inlined_call_operand.vmem [shape: f32[2,16], index: 5, kind: input, shape index: {}]   ;;  %s2160_s6 = inlined_call_operand.vmem [shape: f32[2,16], index: 6, kind: input, shape index: {}]   ;;  %s2161_s7 = inlined_call_operand.vmem [shape: f32[32,16], index: 7, kind: input, shape index: {}]   ;;  %s2162_s8 = inlined_call_operand.vmem [shape: f32[32,32], index: 8, kind: input, shape index: {}]   ;;  %s2163_s9 = inlined_call_operand.vmem [shape: f32[32,32], index: 9, kind: input, shape index: {}]   ;;  %s2164_s10 = inlined_call_operand.vmem [shape: f32[1,32], index: 10, kind: input, shape index: {}]   ;;  %s2165_s11 = inlined_call_operand.vmem [shape: f32[1,32], index: 11, kind: input, shape index: {}]   ;;  %s2166_s12 = inlined_call_operand.vmem [shape: f32[1,32], index: 12, kind: input, shape index: {}]   ;;  %s2167_s13 = inlined_call_operand.vmem [shape: f32[16,64], index: 13, kind: input, shape index: {}]   ;;  %s2168_s14 = inlined_call_operand.vmem [shape: f32[16,64], index: 14, kind: input, shape index: {}]   ;;  %s2169_s15 = inlined_call_operand.vmem [shape: f32[1,64], index: 15, kind: input, shape index: {}]   ;;  %s2170_s16 = inlined_call_operand.vmem [shape: f32[48,16], index: 16, kind: input, shape index: {}]   ;;  %s2171_s17 = inlined_call_operand.vmem [shape: f32[1,16], index: 17, kind: input, shape index: {}]   ;;  %s2172_s18 = inlined_call_operand.vmem [shape: f32[16,32], index: 18, kind: input, shape index: {}]   ;;  %s2173_s19 = inlined_call_operand.vmem [shape: f32[1,32], index: 19, kind: input, shape index: {}]   ;;  %s2174_s20 = inlined_call_operand.vmem [shape: f32[80,1], index: 20, kind: input, shape index: {}]   ;;  %s2175_s21 = inlined_call_operand.<no memory space> [shape: f32[1,1], index: 21, kind: input, shape index: {}]   ;;  %s2176_s22 = inlined_call_operand.vmem [shape: f32[2,1], index: 22, kind: output, shape index: {}]  }
   0x1   :  { %2179 = sst [smem:[#allocation8_spill]] %s2154_s0  ;;  %v27_v0 = vstv %s2175_s21 }
   0x2   :  { %2180 = sst [smem:[#allocation9_spill]] %s2155_s1  ;;  %28 = vst [vmem:[#allocation6] sm:$0x1] %v27_v0 }
   0x3   :  { %2181 = sst [smem:[#allocation10_spill]] %s2156_s2 }
   0x4   :  { %2182 = sst [smem:[#allocation11_spill]] %s2157_s3 }
   0x5   :  { %2183 = sst [smem:[#allocation12_spill]] %s2158_s4 }
   0x6   :  { %2184 = sst [smem:[#allocation13_spill]] %s2159_s5 }
   0x7   :  { %2185 = sst [smem:[#allocation14_spill]] %s2160_s6 }
   0x8   :  { %2186 = sst [smem:[#allocation15_spill]] %s2173_s19 }
   0x9 LB: > { %2187 = sst [smem:[#allocation7_spill]] %s1713_s29  ;;  %s1595_s30 = sadd.s32 4294967295, %s1713_s29   ;;  %s1713_s29 = sphi %s1842_s29, %s34_s29  }
   0xa   : > { %p1598_p0 = scmp.ge.s32.totalorder %s1713_s29, 1  ;;  %p617_p1 = scmp.lt.s32.totalorder %s1713_s29, 5 }
   0xc   : > { %p618_p2 = pnand %p1598_p0, %p617_p1 }
   0xd   : > { %p677_p3 = scmp.lt.s32.totalorder (!%p618_p2), %s1595_s30, 3  ;;  %s2188_s1 = sld [smem:[#allocation8_spill]] (!%p618_p2) }
   0xe   : > { %621 = sbr.rel (%p618_p2) target bundleno = 1874 (0x752), region = 108  ;;  %s2189_s25 = sld [smem:[#allocation9_spill]] (!%p618_p2) }
   0xf   : > { %p1601_p4 = scmp.ne.s32.totalorder (!%p618_p2), %s1595_s30, 0 }
  0x13   : > { %s678_s4 = scalar_select %p677_p3, %s1595_s30, 3 }
  0x14   : > { %688 = sbr.rel (%p1601_p4) target bundleno = 30 (0x1e), region = 112  ;;  %s2190_s3 = sld [smem:[#allocation13_spill]] (!%p1601_p4) }
  0x15   : > { %s1599_s0 = sshll.u32 %s678_s4, 1  ;;  %s2191_s19 = sld [smem:[#allocation14_spill]] (!%p1601_p4) }
  0x16   : > { %s680_s5 = scalar_lea.vmem %s2188_s1, %s1599_s0  ;;  %s1856_s26 = scalar_lea.vmem %s2189_s25, %s1599_s0 }
  0x19   : > { %vm690_vm0 = vcmask 123904   ;;  %vm694_vm1 = vcmask 58368   ;;  %vm696_vm2 = vcmask 1024   ;;  %v1715_v3 = vmov 0.0  }
  0x1a   : > { %v689_v1 = vld [vmem:[%s2190_s3] sm:$0x3]  ;;  %695 = vst.msk [vmem:[#allocation4] sm:$0x3] %vm694_vm1, %v1715_v3 }
  0x1b   : > { %v692_v2 = vld [vmem:[%s2191_s19] sm:$0x3]  ;;  %691 = vst.msk [vmem:[#allocation2] sm:$0x3] %vm690_vm0, %v689_v1 }
  0x1c   : > { %693 = vst.msk [vmem:[#allocation3] sm:$0x3] %vm690_vm0, %v692_v2 }
  0x1d   : > { %698 = vst.msk [vmem:[%s2176_s22] sm:$0x3] %vm696_vm2, %v1715_v3 }
  0x1e PF: > { %v780_v4 = vld [vmem:[%s2163_s9 + $0x18] sm:$0xff]  ;;  %v778_v5 = vld [vmem:[%s2163_s9 + $0x8] sm:$0xff]  ;;  %v702_v7 = vlaneseq  ;;  %v779_v8 = vld [vmem:[%s2163_s9 + $0x10] sm:$0xff]  ;;  %vm781_vm3 = vcmask 130048   ;;  %v1716_v11 = vmov 0   ;;  %vm714_vm5 = vcmask 261120  }
  0x1f   : > { %v747_v6 = vld [vmem:[%s2162_s8 + $0x18] sm:$0xff]  ;;  %799 = vmatpush.msra.mxu2 %v780_v4  ;;  %822 = vmatpush.msra.mxu3 %v778_v5  ;;  %v777_v9 = vld [vmem:[%s2163_s9] sm:$0xff]  ;;  %v746_v14 = vld [vmem:[%s2162_s8 + $0x10] sm:$0xff]  ;;  %s2192_s19 = sld [smem:[#allocation10_spill]]  ;;  %v1717_v30 = vmov 0.0   ;;  %vm881_vm7 = vcmask 1041409  }
  0x20   : > { %v699_v10 = vld [vmem:[%s680_s5] sm:$0x3]  ;;  %1652 = vset.pattern.permute.xlu0 %v1716_v11  ;;  %766 = vmatpush.msra.mxu1 %v747_v6  ;;  %v745_v16 = vld [vmem:[%s2162_s8 + $0x8] sm:$0xff]  ;;  %v1898_v18 = vshrl.u32 %v702_v7, 7  ;;  %v713_v19 = vld [vmem:[%s2161_s7 + $0x18] sm:$0xff]  ;;  %v1937_v28 = vand.u32 127, %v702_v7 }
  0x21   : > { %vm700_vm4 = vcmp.ge.s32.totalorder %v699_v10, 32  ;;  %800 = vmatpush.msra.mxu2 %v779_v8  ;;  %823 = vmatpush.msra.mxu3 %v777_v9  ;;  %v744_v17 = vld [vmem:[%s2162_s8] sm:$0xff]  ;;  %v712_v21 = vld [vmem:[%s2161_s7 + $0x10] sm:$0xff]  ;;  %v711_v22 = vld [vmem:[%s2161_s7 + $0x8] sm:$0xff]  ;;  %vm884_vm8 = vcmask 58368   ;;  %s1718_s4 = smov 96  }
  0x22   : > { %v1885_v13 = vld [vmem:[#allocation2] sm:$0x3]  ;;  %v701_v15 = vsel %vm700_vm4, 1, %v699_v10  ;;  %767 = vmatpush.msra.mxu1 %v746_v14  ;;  %1654 = vset.pattern.permute.xlu1 %v1898_v18  ;;  %v1918_v23 = vld [vmem:[#allocation4] sm:$0x3]  ;;  %v1053_v32 = vld [vmem:[%s2168_s14 + $0x8] sm:$0xff] }
  0x23   : > { %v1883_v12 = vld [vmem:[#allocation3] sm:$0x3]  ;;  %705 = vperm.xlu0 %1652, %v701_v15   ;;  %1607 = vmatmul.msk.f32.vlgmr.msra.gmra.mxu3 %vm781_vm3, %v1885_v13  ;;  %v840_v24 = vperm.slane %v1918_v23, 1  ;;  %v833_v26 = vperm.slane %v1918_v23, 0  ;;  %v1051_v33 = vld [vmem:[%s2167_s13 + $0x8] sm:$0xff]  ;;  %s2193_s21 = sld [smem:[#allocation12_spill]] }
  0x24   : > { %1606 = vmatmul.msk.f32.vlgmr.msra.gmra.mxu2 %vm781_vm3, %v1883_v12  ;;  %730 = vmatpush.msra.mxu0 %v713_v19  ;;  %v710_v27 = vld [vmem:[%s2161_s7] sm:$0xff]  ;;  %s1719_s23 = smov 16   ;;  %s1720_s1 = smov 32  }
  0x25   : > { %v1908_v20 = vld [vmem:[%s2192_s19] sm:$0xff]  ;;  %768 = vmatpush.msra.mxu1 %v745_v16  ;;  %1655 = vset.pattern.permute.xlu2 %v1716_v11  ;;  %v1927_v25 = vld [vmem:[%s2192_s19 + $0x8] sm:$0xff]  ;;  %s1721_s29 = smov 112   ;;  %s1722_s24 = smov 80  }
  0x26   : > { %731 = vmatpush.msra.mxu0 %v712_v21  ;;  %1068 = vmatpush.msrb.mxu2 %v1053_v32  ;;  %v1666_v36 = vld [vmem:[%s2164_s10] ss:$0 sm:$0xff] }
  0x27   : > { %769 = vmatpush.msra.mxu1 %v744_v17  ;;  %1091 = vmatpush.msrb.mxu3 %v1051_v33  ;;  %v1667_v39 = vld [vmem:[%s2165_s11] ss:$0 sm:$0xff] }
  0x28   : > { %1604 = vmatmul.msk.f32.vlgmr.msra.gmra.mxu1 %vm714_vm5, %v1908_v20  ;;  %732 = vmatpush.msra.mxu0 %v711_v22  ;;  %v1668_v53 = vld [vmem:[%s2166_s12] ss:$0 sm:$0xff] }
  0x29   : > { %v1052_v60 = vld [vmem:[%s2168_s14] sm:$0xff] }
  0x2a   : > { %845 = vperm.xlu1 %1654, %v840_v24   ;;  %733 = vmatpush.msra.mxu0 %v710_v27  ;;  %v1050_v61 = vld [vmem:[%s2167_s13] sm:$0xff] }
  0x2b   : > { %1653 = vset.pattern.permute.xlu0 %v1898_v18  ;;  %1069 = vmatpush.msrb.mxu2 %v1052_v60  ;;  %v1669_v6 = vld [vmem:[%s2169_s15] ss:$0 sm:$0xff] }
  0x2c   : > { %1092 = vmatpush.msrb.mxu3 %v1050_v61  ;;  %1608 = vmatmul.msk.f32.vlgmr.msrb.gmra.mxu2 %vm781_vm3, %v1885_v13 }
  0x30   : > { %1605 = vmatmul.msk.f32.gmra.mxu1 %vm714_vm5, %v1927_v25 }
  0x32   : > { %1659 = vset.pattern.permute.xlu1 %v1716_v11 }
  0x33   : > { %838 = vperm.xlu0 %1653, %v833_v26  }
  0x3b   : > { %1656 = vset.pattern.permute.xlu0 %v1716_v11 }
  0x95   : > { %v706_v29 = vpop.permute.xlu0 %705 }
  0x96   : > { %vm707_vm6 = vcmp.eq.s32.totalorder %v706_v29, %v1937_v28 }
  0x97   : > { %v1602_v31 = vsel %vm707_vm6, 1.0, %v1717_v30 }
  0x98   : > { %1603 = vmatmul.msk.f32.vlgmr.msra.gmra.mxu0 %vm714_vm5, %v1602_v31 }
  0x9c   : > { %v846_v42 = vpop.permute.xlu1 %845 }
  0x9d   : > { %v852_v49 = vmul.f32 %v1667_v39, %v846_v42 }
  0xa5   : > { %v771_v34 = vpop.f32.mrf.mxu1  ;;  %v839_v40 = vpop.permute.xlu0 %838 }
  0xa6   : > { %v825_v37 = vpop.f32.mrf.mxu3  ;;  %v851_v44 = vmul.f32 %v1667_v39, %v839_v40 }
  0xa7   : > { %v802_v35 = vpop.f32.mrf.mxu2 }
  0xa8   : > { %v826_v38 = vadd.f32 %v825_v37, %v802_v35  ;;  %v743_v35 = vld [vmem:[%s2193_s21] sm:$0x3]  ;;  %s2194_s21 = sld [smem:[#allocation15_spill]] }
  0xa9   : > { %v950_v37 = vperm.slane %v743_v35, 0  ;;  %v957_v42 = vperm.slane %v743_v35, 1 }
  0xaa   : > { %v832_v41 = vadd.f32 %v1666_v36, %v826_v38 }
  0xac   : > { %v855_v43 = vperm.slane %v832_v41, 0  ;;  %v854_v45 = vrot.slane %v832_v41, 1 }
  0xad   : > { %v774_v47 = vpop.f32.mrf.mxu1 }
  0xae   : > { %v859_v46 = vadd.f32 %v855_v43, %v771_v34  ;;  %v856_v48 = vperm.slane %v854_v45, 0 }
  0xaf   : > { %v1071_v5 = vpop.f32.mrf.mxu2 }
  0xb0   : > { %v861_v50 = vadd.f32 %v859_v46, %v851_v44  ;;  %v860_v51 = vadd.f32 %v856_v48, %v774_v47 }
  0xb2   : > { %1673 = vtanh.f32 %v861_v50  ;;  %v862_v52 = vadd.f32 %v860_v51, %v852_v49 }
  0xb4   : > { %1675 = vtanh.f32 %v862_v52 }
  0xb8   : > { %v1674_v54 = vpop.eup %1673 }
  0xb9   : > { %v869_v55 = vmul.f32 %v1674_v54, %v1668_v53 }
  0xba   : > { %v1676_v56 = vpop.eup %1675 }
  0xbb   : > { %v871_v57 = vsel %vm714_vm5, %v869_v55, 0.0  ;;  %v870_v58 = vmul.f32 %v1676_v56, %v1668_v53 }
  0xbc   : > { %872 = vadd.xlane.f32.xlu1 %v871_v57 }
  0xbd   : > { %v874_v59 = vsel %vm714_vm5, %v870_v58, 0.0 }
  0xbe   : > { %875 = vadd.xlane.f32.xlu2 %v874_v59 }
 0x115   : > { %v1967_v62 = vpop.f32.mrf.mxu0 }
 0x116   : > { %1609 = vmatmul.msk.f32.vlgmr.msrb.gmra.mxu3 %vm781_vm3, %v1967_v62 }
 0x12f   : > { %v873_v63 = vpop.xlane.xlu1 %872 }
 0x130   : > { %v879_v1 = vperm.slane %v873_v63, %v1937_v28 }
 0x131   : > { %v876_v0 = vpop.xlane.xlu2 %875 }
 0x132   : > { %v880_v2 = vperm.slane %v876_v0, %v1937_v28 }
 0x134   : > { %v882_v3 = vsel %vm881_vm7, %v880_v2, %v879_v1 }
 0x135   : > { %v885_v4 = vsel %vm884_vm8, %v882_v3, -inf }
 0x136   : > { %886 = vmax.xlane.f32.xlu2 %v885_v4 }
 0x199   : > { %v1094_v7 = vpop.f32.mrf.mxu3 }
 0x19a   : > { %v1095_v8 = vadd.f32 %v1094_v7, %v1071_v5 }
 0x19c   : > { %v1101_v9 = vadd.f32 %v1669_v6, %v1095_v8 }
 0x19e   : > { %1677 = vtanh.f32 %v1101_v9  ;;  %v1610_v26 = vmul.f32 -1.442695, %v1101_v9 }
 0x1a4   : > { %v1678_v10 = vpop.eup %1677 }
 0x1a5   : > { %1127 = vrot.lane.b32.xlu1 %v1678_v10, %s1718_s4 }
 0x1a9   : > { %v887_v13 = vpop.xlane.xlu2 %886 }
 0x1aa   : > { %v889_v14 = vperm.slane %v887_v13, 0  ;;  %v890_v15 = vperm.slane %v887_v13, 1 }
 0x1ac   : > { %v893_v16 = vsub.f32 %v873_v63, %v889_v14  ;;  %v894_v17 = vsub.f32 %v876_v0, %v890_v15 }
 0x1ae   : > { %v895_v19 = vmul.f32 1.442695, %v893_v16  ;;  %v897_v21 = vmul.f32 1.442695, %v894_v17 }
 0x1b0   : > { %1679 = vpow2.f32 %v895_v19 }
 0x1b1   : > { %1681 = vpow2.f32 %v897_v21 }
 0x1b2   : > { %1683 = vpow2.f32 %v1610_v26 }
 0x1b6   : > { %v1978_v22 = vpop.eup %1679 }
 0x1b7   : > { %v1980_v24 = vpop.eup %1681  ;;  %902 = vperm.xlu2 %1655, %v1978_v22  }
 0x1b8   : > { %905 = vperm.xlu0 %1656, %v1980_v24   ;;  %v1684_v27 = vpop.eup %1683 }
 0x1b9   : > { %v1105_v29 = vadd.f32 1.0, %v1684_v27 }
 0x1bb   : > { %1685 = vrcp.f32 %v1105_v29  ;;  %vm1111_vm9 = vweird.f32 %v1105_v29  ;;  %v1117_v38 = vand.u32 2147483648, %v1105_v29  ;;  %v1115_v39 = vand.u32 2147483647, %v1105_v29 }
 0x1bd   : > { %v1118_v41 = vor.u32 1.1754944e-38, %v1117_v38  ;;  %vm1116_vm12 = vcmp.eq.f32.partialorder %v1115_v39, 8.507059e+37 }
 0x1bf   : > { %1657 = vset.pattern.permute.xlu2 %v1898_v18 }
 0x1c0   : > { %1661 = vset.pattern.permute.xlu0 %v1898_v18 }
 0x1c1   : > { %v1686_v31 = vpop.eup %1685 }
 0x1c2   : > { %v1107_v32 = vmul.f32 %v1686_v31, %v1105_v29  ;;  %vm1112_vm10 = vweird.f32 %v1686_v31 }
 0x1c3   : > { %vm1113_vm11 = vmor %vm1111_vm9, %vm1112_vm10 }
 0x1c4   : > { %v1108_v33 = vsub.f32 1.0, %v1107_v32 }
 0x1c6   : > { %v1109_v34 = vmul.f32 %v1686_v31, %v1108_v33 }
 0x1c7   : > { %955 = vperm.xlu2 %1657, %v950_v37  }
 0x1c8   : > { %v1110_v36 = vadd.f32 %v1686_v31, %v1109_v34 }
 0x1ca   : > { %v1114_v40 = vsel %vm1113_vm11, %v1686_v31, %v1110_v36 }
 0x1cb   : > { %v1989_v43 = vsel %vm1116_vm12, %v1118_v41, %v1114_v40 }
 0x1cf   : > { %962 = vperm.xlu2 %1657, %v957_v42  }
 0x1d7   : > { %1658 = vset.pattern.permute.xlu2 %v1716_v11 }
 0x211   : > { %v903_v46 = vpop.permute.xlu2 %902 }
 0x212   : > { %v907_v48 = vperm.slane %v903_v46, %v1937_v28 }
 0x217   : > { %v1128_v44 = vpop.permute.xlu1 %1127 }
 0x218   : > { %v1130_v45 = vmul.f32 %v1128_v44, %v1989_v43 }
 0x21a   : > { %1132 = vrot.lane.b32.xlu1 %v1130_v45, %s1719_s23 }
 0x221   : > { %v956_v4 = vpop.permute.xlu2 %955 }
 0x229   : > { %v963_v19 = vpop.permute.xlu2 %962 }
 0x22a   : > { %v906_v47 = vpop.permute.xlu0 %905 }
 0x22b   : > { %v908_v49 = vperm.slane %v906_v47, %v1937_v28 }
 0x22d   : > { %v909_v50 = vsel %vm881_vm7, %v908_v49, %v907_v48 }
 0x22e   : > { %v911_v51 = vsel %vm884_vm8, %v909_v50, 0.0 }
 0x22f   : > { %912 = vadd.xlane.f32.xlu0 %v911_v51 }
 0x28c   : > { %v1133_v34 = vpop.permute.xlu1 %1132 }
 0x2a2   : > { %v913_v52 = vpop.xlane.xlu0 %912 }
 0x2a3   : > { %v915_v53 = vperm.slane %v913_v52, 0  ;;  %v916_v54 = vperm.slane %v913_v52, 1 }
 0x2a5   : > { %1687 = vrcp.f32 %v915_v53  ;;  %v930_v60 = vand.u32 2147483648, %v915_v53  ;;  %v928_v0 = vand.u32 2147483647, %v915_v53  ;;  %vm924_vm14 = vweird.f32 %v915_v53 }
 0x2a6   : > { %1689 = vrcp.f32 %v916_v54  ;;  %v945_v6 = vand.u32 2147483648, %v916_v54  ;;  %vm939_vm2 = vweird.f32 %v916_v54  ;;  %v943_v8 = vand.u32 2147483647, %v916_v54 }
 0x2a7   : > { %v931_v3 = vor.u32 1.1754944e-38, %v930_v60  ;;  %vm929_vm1 = vcmp.eq.f32.partialorder %v928_v0, 8.507059e+37 }
 0x2a8   : > { %v946_v14 = vor.u32 1.1754944e-38, %v945_v6  ;;  %vm944_vm6 = vcmp.eq.f32.partialorder %v943_v8, 8.507059e+37  ;;  %v1267_v6 = vld [vmem:[%s2174_s20 + $0x10] sm:$0xff]  ;;  %v1266_v8 = vld [vmem:[%s2174_s20 + $0x8] sm:$0xff] }
 0x2ab   : > { %v1688_v55 = vpop.eup %1687 }
 0x2ac   : > { %v1690_v56 = vpop.eup %1689  ;;  %v920_v57 = vmul.f32 %v1688_v55, %v915_v53  ;;  %vm925_vm13 = vweird.f32 %v1688_v55 }
 0x2ad   : > { %v935_v58 = vmul.f32 %v1690_v56, %v916_v54  ;;  %vm940_vm15 = vweird.f32 %v1690_v56  ;;  %vm926_vm0 = vmor %vm924_vm14, %vm925_vm13  ;;  %vm1146_vm14 = vcmask 123904  }
 0x2ae   : > { %v921_v59 = vsub.f32 1.0, %v920_v57  ;;  %vm941_vm4 = vmor %vm939_vm2, %vm940_vm15  ;;  %vm1240_vm2 = vcmask 254976  }
 0x2af   : > { %v936_v61 = vsub.f32 1.0, %v935_v58 }
 0x2b0   : > { %v922_v63 = vmul.f32 %v1688_v55, %v921_v59 }
 0x2b1   : > { %v937_v1 = vmul.f32 %v1690_v56, %v936_v61 }
 0x2b2   : > { %v923_v2 = vadd.f32 %v1688_v55, %v922_v63 }
 0x2b3   : > { %v938_v5 = vadd.f32 %v1690_v56, %v937_v1 }
 0x2b4   : > { %v927_v7 = vsel %vm926_vm0, %v1688_v55, %v923_v2  ;;  %v1154_v2 = vld [vmem:[%s2170_s16 + $0x8] sm:$0xff] }
 0x2b5   : > { %v932_v9 = vsel %vm929_vm1, %v931_v3, %v927_v7  ;;  %v942_v13 = vsel %vm941_vm4, %v1690_v56, %v938_v5  ;;  %1200 = vmatpush.msra.mxu2 %v1154_v2  ;;  %v1153_v3 = vld [vmem:[%s2170_s16] sm:$0xff]  ;;  %v1156_v7 = vld [vmem:[%s2170_s16 + $0x18] sm:$0xff] }
 0x2b6   : > { %v933_v10 = vmul.f32 %v1978_v22, %v932_v9  ;;  %v947_v16 = vsel %vm944_vm6, %v946_v14, %v942_v13  ;;  %v1157_v5 = vld [vmem:[%s2170_s16 + $0x20] sm:$0xff]  ;;  %v1312_v9 = vld [vmem:[%s2174_s20 + $0x38] sm:$0xff]  ;;  %v1311_v14 = vld [vmem:[%s2174_s20 + $0x30] sm:$0xff] }
 0x2b7   : > { %v948_v17 = vmul.f32 %v1980_v24, %v947_v16  ;;  %1201 = vmatpush.msra.mxu2 %v1153_v3  ;;  %v1265_v13 = vld [vmem:[%s2174_s20] sm:$0xff] }
 0x2b8   : > { %v966_v15 = vmul.f32 %v956_v4, %v933_v10  ;;  %v1158_v4 = vld [vmem:[%s2170_s16 + $0x28] sm:$0xff]  ;;  %v1155_v10 = vld [vmem:[%s2170_s16 + $0x10] sm:$0xff]  ;;  %v1269_v16 = vld [vmem:[%s2174_s20 + $0x20] sm:$0xff] }
 0x2b9   : > { %v967_v21 = vmul.f32 %v963_v19, %v948_v17  ;;  %1176 = vmatpush.msrb.mxu0 %v1158_v4  ;;  %1329 = vmatpush.msrb.mxu2 %v1312_v9 }
 0x2ba   : > { %971 = vperm.xlu2 %1658, %v966_v15  }
 0x2bb   : > { %1177 = vmatpush.msrb.mxu0 %v1157_v5  ;;  %1330 = vmatpush.msrb.mxu2 %v1311_v14 }
 0x2bd   : > { %1178 = vmatpush.msrb.mxu0 %v1156_v7 }
 0x2bf   : > { %1179 = vmatpush.msrb.mxu0 %v1155_v10 }
 0x2c2   : > { %974 = vperm.xlu2 %1658, %v967_v21  }
 0x2ca   : > { %1122 = vrot.lane.b32.xlu2 %v1883_v12, %s1719_s23 }
 0x314   : > { %v972_v26 = vpop.permute.xlu2 %971 }
 0x315   : > { %v976_v29 = vperm.slane %v972_v26, %v1937_v28 }
 0x31c   : > { %v975_v27 = vpop.permute.xlu2 %974 }
 0x31d   : > { %v977_v22 = vperm.slane %v975_v27, %v1937_v28 }
 0x31f   : > { %v978_v31 = vsel %vm881_vm7, %v977_v22, %v976_v29 }
 0x320   : > { %v980_v32 = vsel %vm884_vm8, %v978_v31, 0.0 }
 0x321   : > { %981 = vadd.xlane.f32.xlu2 %v980_v32 }
 0x324   : > { %v1123_v33 = vpop.permute.xlu2 %1122 }
 0x325   : > { %v1125_v24 = vmul.f32 %v1123_v33, %v1989_v43 }
 0x327   : > { %v1135_v35 = vadd.f32 %v1133_v34, %v1125_v24 }
 0x329   : > { %1691 = vtanh.f32 %v1135_v35 }
 0x32f   : > { %v1692_v36 = vpop.eup %1691 }
 0x330   : > { %1138 = vrot.lane.b32.xlu0 %v1692_v36, %s1720_s1 }
 0x338   : > { %1149 = vrot.lane.b32.xlu0 %v1135_v35, %s1721_s29  ;;  %s2195_s29 = sld [smem:[#allocation11_spill]] }
 0x394   : > { %v982_v12 = vpop.xlane.xlu2 %981 }
 0x395   : > { %v984_v37 = vperm.slane %v982_v12, 0  ;;  %v985_v38 = vperm.slane %v982_v12, 1 }
 0x397   : > { %1693 = vrcp.f32 %v984_v37  ;;  %v999_v46 = vand.u32 2147483648, %v984_v37  ;;  %v997_v49 = vand.u32 2147483647, %v984_v37  ;;  %vm993_vm10 = vweird.f32 %v984_v37 }
 0x398   : > { %1695 = vrcp.f32 %v985_v38  ;;  %v1014_v56 = vand.u32 2147483648, %v985_v38  ;;  %vm1008_vm15 = vweird.f32 %v985_v38  ;;  %v1012_v58 = vand.u32 2147483647, %v985_v38 }
 0x399   : > { %v1000_v52 = vor.u32 1.1754944e-38, %v999_v46  ;;  %vm998_vm12 = vcmp.eq.f32.partialorder %v997_v49, 8.507059e+37  ;;  %v1337_v46 = vld [vmem:[%s2174_s20 + $0x48] sm:$0xff] }
 0x39a   : > { %v1015_v61 = vor.u32 1.1754944e-38, %v1014_v56  ;;  %vm1013_vm1 = vcmp.eq.f32.partialorder %v1012_v58, 8.507059e+37 }
 0x39d   : > { %v1694_v39 = vpop.eup %1693 }
 0x39e   : > { %v1696_v40 = vpop.eup %1695  ;;  %v989_v41 = vmul.f32 %v1694_v39, %v984_v37  ;;  %vm994_vm9 = vweird.f32 %v1694_v39 }
 0x39f   : > { %v1004_v42 = vmul.f32 %v1696_v40, %v985_v38  ;;  %vm995_vm11 = vmor %vm993_vm10, %vm994_vm9  ;;  %vm1009_vm13 = vweird.f32 %v1696_v40 }
 0x3a0   : > { %v990_v44 = vsub.f32 1.0, %v989_v41  ;;  %vm1010_vm0 = vmor %vm1008_vm15, %vm1009_vm13  ;;  %vm1390_vm13 = vcmp.eq.s32.totalorder %v1898_v18, %v1937_v28 }
 0x3a1   : > { %v1005_v45 = vsub.f32 1.0, %v1004_v42 }
 0x3a2   : > { %v1139_v47 = vpop.permute.xlu0 %1138  ;;  %v991_v48 = vmul.f32 %v1694_v39, %v990_v44 }
 0x3a3   : > { %v1006_v50 = vmul.f32 %v1696_v40, %v1005_v45  ;;  %v1141_v1 = vmul.f32 %v1139_v47, %v1989_v43  ;;  %v1268_v43 = vld [vmem:[%s2174_s20 + $0x18] sm:$0xff]  ;;  %v1336_v47 = vld [vmem:[%s2174_s20 + $0x40] sm:$0xff] }
 0x3a4   : > { %v992_v51 = vadd.f32 %v1694_v39, %v991_v48  ;;  %1303 = vmatpush.msrb.mxu1 %v1268_v43  ;;  %v1670_v48 = vld [vmem:[%s2171_s17] ss:$0 sm:$0xff] }
 0x3a5   : > { %v1007_v54 = vadd.f32 %v1696_v40, %v1006_v50 }
 0x3a6   : > { %v996_v53 = vsel %vm995_vm11, %v1694_v39, %v992_v51  ;;  %1304 = vmatpush.msrb.mxu1 %v1267_v6 }
 0x3a7   : > { %v1001_v55 = vsel %vm998_vm12, %v1000_v52, %v996_v53  ;;  %v1011_v60 = vsel %vm1010_vm0, %v1696_v40, %v1007_v54  ;;  %v1671_v53 = vld [vmem:[%s2194_s21] ss:$0 sm:$0xff] }
 0x3a8   : > { %v2007_v57 = vmul.f32 %v1001_v55, %v966_v15  ;;  %v1016_v63 = vsel %vm1013_vm1, %v1015_v61, %v1011_v60  ;;  %1305 = vmatpush.msrb.mxu1 %v1266_v8  ;;  %v1270_v15 = vld [vmem:[%s2174_s20 + $0x28] sm:$0xff] }
 0x3a9   : > { %v2014_v0 = vmul.f32 %v1016_v63, %v967_v21  ;;  %1285 = vmatpush.msra.mxu0 %v1270_v15  ;;  %v1212_v21 = vld [vmem:[%s2172_s18 + $0x8] sm:$0xff] }
 0x3aa   : > { %1020 = vperm.xlu1 %1659, %v2007_v57   ;;  %v2010_v59 = vpop.permute.xlu0 %1149  ;;  %1306 = vmatpush.msrb.mxu1 %v1265_v13 }
 0x3ab   : > { %1152 = vst.msk [vmem:[#allocation3] sm:$0x3] %vm1146_vm14, %v2010_v59  ;;  %1286 = vmatpush.msra.mxu0 %v1269_v16  ;;  %1234 = vmatpush.msra.mxu3 %v1212_v21 }
 0x3b2   : > { %1025 = vperm.xlu1 %1659, %v2014_v0  }
 0x3ba   : > { %1143 = vrot.lane.b32.xlu1 %v1141_v1, %s1722_s24  ;;  %v1672_v1 = vld [vmem:[#allocation6] ss:$0 sm:$0xff] }
 0x3bb   : > { %1660 = vset.pattern.permute.xlu1 %v1898_v18 }
 0x41c   : > { %v1021_v17 = vpop.permute.xlu1 %1020 }
 0x41d   : > { %v1028_v19 = vmul.f32 %v1021_v17, %v1908_v20  ;;  %v1044_v31 = vperm.slane %v1021_v17, %v1937_v28 }
 0x41f   : > { %v1030_v26 = vsel %vm714_vm5, %v1028_v19, 0.0 }
 0x420   : > { %v1031_v27 = vrot.slane %v1030_v26, 4 }
 0x422   : > { %v1032_v29 = vadd.f32 %v1031_v27, %v1030_v26 }
 0x424   : > { %v1026_v22 = vpop.permute.xlu1 %1025  ;;  %v1033_v24 = vrot.slane %v1032_v29, 2 }
 0x425   : > { %v1029_v32 = vmul.f32 %v1026_v22, %v1927_v25  ;;  %v1045_v33 = vperm.slane %v1026_v22, %v1937_v28 }
 0x426   : > { %v1034_v12 = vadd.f32 %v1033_v24, %v1032_v29  ;;  %v1415_v29 = vld [vmem:[%s2195_s29] sm:$0x3] }
 0x427   : > { %v1037_v34 = vsel %vm714_vm5, %v1029_v32, 0.0  ;;  %v2071_v20 = vsel %vm881_vm7, %v1045_v33, %v1044_v31  ;;  %v1416_v22 = vperm.slane %v1415_v29, 0  ;;  %v1423_v31 = vperm.slane %v1415_v29, 1 }
 0x428   : > { %v1038_v35 = vrot.slane %v1037_v34, 4  ;;  %v2075_v36 = vadd.f32 %v2071_v20, %v1918_v23  ;;  %v1035_v39 = vrot.slane %v1034_v12, 1  ;;  %v1211_v23 = vld [vmem:[%s2172_s18] sm:$0xff] }
 0x429   : > { %1235 = vmatpush.msra.mxu3 %v1211_v23 }
 0x42a   : > { %v1039_v37 = vadd.f32 %v1038_v35, %v1037_v34  ;;  %1049 = vst.msk [vmem:[#allocation4] sm:$0x3] %vm884_vm8, %v2075_v36  ;;  %v1036_v42 = vadd.f32 %v1035_v39, %v1034_v12  ;;  %v1512_v6 = vperm.slane %v2075_v36, 0 }
 0x42b   : > { %1352 = vmatpush.msrb.mxu3 %v1337_v46 }
 0x42c   : > { %v1040_v38 = vrot.slane %v1039_v37, 2  ;;  %v1144_v25 = vpop.permute.xlu1 %1143 }
 0x42d   : > { %1147 = vst.msk [vmem:[#allocation2] sm:$0x3] %vm1146_vm14, %v1144_v25  ;;  %1612 = vmatmul.msk.f32.vlgmr.msra.gmra.mxu2 %vm781_vm3, %v1144_v25  ;;  %1353 = vmatpush.msrb.mxu3 %v1336_v47 }
 0x42e   : > { %v1041_v40 = vadd.f32 %v1040_v38, %v1039_v37 }
 0x430   : > { %v1042_v41 = vrot.slane %v1041_v40, 1 }
 0x432   : > { %v1043_v44 = vadd.f32 %v1042_v41, %v1041_v40  ;;  %v1519_v40 = vperm.slane %v2075_v36, 1  ;;  %v1388_v36 = vadd.s32 16, %v1898_v18 }
 0x434   : > { %v1161_v45 = vsel %vm881_vm7, %v1043_v44, %v1036_v42  ;;  %v1389_v44 = vadd.s32 24, %v1898_v18  ;;  %vm1392_vm11 = vcmp.eq.s32.totalorder %v1388_v36, %v1937_v28 }
 0x435   : > { %1611 = vmatmul.msk.f32.vlgmr.msrb.gmra.mxu0 %vm714_vm5, %v1161_v45  ;;  %1615 = vmatmul.msk.f32.vlgmr.msrb.gmra.mxu1 %vm714_vm5, %v1161_v45  ;;  %v1723_v45 = vmov 1.0  }
 0x436   : > { %1616 = vmatmul.msk.f32.vlgmr.msrb.gmra.mxu2 %vm781_vm3, %v2010_v59  ;;  %vm1393_vm10 = vcmp.eq.s32.totalorder %v1389_v44, %v1937_v28  ;;  %v1551_v44 = vld [vmem:[%s2176_s22] sm:$0x3] }
 0x437   : > { %1625 = vmatpush.msk.msrb.mxu0 %vm1393_vm10, %v1723_v45 }
 0x439   : > { %1626 = vmatpush.msk.msrb.mxu0 %vm1392_vm11, %v1723_v45 }
 0x43d   : > { %1614 = vmatmul.msk.f32.vlgmr.msra.gmra.mxu0 %vm781_vm3, %v1144_v25 }
 0x4b0   : > { %v1203_v49 = vpop.f32.mrf.mxu2 }
 0x4b2   : > { %v1181_v50 = vpop.f32.mrf.mxu0  ;;  %v1308_v58 = vpop.f32.mrf.mxu1 }
 0x4b3   : > { %v1204_v51 = vadd.f32 %v1203_v49, %v1181_v50 }
 0x4b5   : > { %v1210_v52 = vadd.f32 %v1670_v48, %v1204_v51 }
 0x4b7   : > { %1613 = vmatmul.msk.f32.vlgmr.msra.gmra.mxu3 %vm781_vm3, %v1210_v52 }
 0x4b9   : > { %v1332_v61 = vpop.f32.mrf.mxu2 }
 0x4ba   : > { %v1288_v54 = vpop.f32.mrf.mxu0 }
 0x4bb   : > { %v1309_v59 = vadd.f32 %v1308_v58, %v1288_v54 }
 0x4bd   : > { %v1335_v63 = vadd.f32 %v1332_v61, %v1309_v59 }
 0x4bf   : > { %1617 = vmatmul.msk.f32.vlgmr.msrb.gmra.mxu3 %vm781_vm3, %v1967_v62 }
 0x53a   : > { %v1237_v55 = vpop.f32.mrf.mxu3 }
 0x53b   : > { %v1238_v56 = vadd.f32 %v1671_v53, %v1237_v55 }
 0x53d   : > { %v1241_v60 = vsel %vm1240_vm2, %v1238_v56, -inf }
 0x53e   : > { %1242 = vmax.xlane.f32.xlu1 %v1241_v60 }
 0x542   : > { %v1355_v2 = vpop.f32.mrf.mxu3 }
 0x543   : > { %v1358_v3 = vadd.f32 %v1355_v2, %v1335_v63 }
 0x545   : > { %v1363_v4 = vadd.f32 %v1672_v1, %v1358_v3 }
 0x547   : > { %v1618_v62 = vmul.f32 -1.442695, %v1363_v4 }
 0x549   : > { %1697 = vpow2.f32 %v1618_v62 }
 0x54f   : > { %v1698_v43 = vpop.eup %1697 }
 0x550   : > { %v1367_v5 = vadd.f32 1.0, %v1698_v43 }
 0x552   : > { %1699 = vrcp.f32 %v1367_v5  ;;  %v1379_v10 = vand.u32 2147483648, %v1367_v5  ;;  %v1377_v14 = vand.u32 2147483647, %v1367_v5  ;;  %vm1373_vm4 = vweird.f32 %v1367_v5 }
 0x554   : > { %v1380_v16 = vor.u32 1.1754944e-38, %v1379_v10  ;;  %vm1378_vm9 = vcmp.eq.f32.partialorder %v1377_v14, 8.507059e+37 }
 0x557   : > { %1517 = vperm.xlu1 %1660, %v1512_v6  }
 0x558   : > { %v1700_v7 = vpop.eup %1699 }
 0x559   : > { %v1369_v8 = vmul.f32 %v1700_v7, %v1367_v5  ;;  %vm1374_vm3 = vweird.f32 %v1700_v7 }
 0x55a   : > { %vm1375_vm6 = vmor %vm1373_vm4, %vm1374_vm3 }
 0x55b   : > { %v1370_v9 = vsub.f32 1.0, %v1369_v8 }
 0x55d   : > { %v1371_v13 = vmul.f32 %v1700_v7, %v1370_v9 }
 0x55f   : > { %v1372_v15 = vadd.f32 %v1700_v7, %v1371_v13 }
 0x561   : > { %v1376_v17 = vsel %vm1375_vm6, %v1700_v7, %v1372_v15 }
 0x562   : > { %v1381_v19 = vsel %vm1378_vm9, %v1380_v16, %v1376_v17 }
 0x563   : > { %v1383_v21 = vmax.f32 %v1381_v19, 0.001 }
 0x565   : > { %v1384_v26 = vmin.f32 %v1383_v21, 0.999 }
 0x567   : > { %1404 = vperm.xlu2 %1658, %v1384_v26   ;;  %v1408_v27 = vsub.f32 1.0, %v1384_v26 }
 0x56f   : > { %1411 = vperm.xlu2 %1658, %v1408_v27  }
 0x577   : > { %1662 = vset.pattern.permute.xlu2 %v1898_v18 }
 0x57f   : > { %1421 = vperm.xlu2 %1662, %v1416_v22  }
 0x587   : > { %1428 = vperm.xlu2 %1662, %v1423_v31  }
 0x5b1   : > { %v1243_v32 = vpop.xlane.xlu1 %1242 }
 0x5b2   : > { %v1244_v33 = vsub.f32 %v1238_v56, %v1243_v32 }
 0x5b4   : > { %v1245_v24 = vmul.f32 1.442695, %v1244_v33 }
 0x5b6   : > { %1701 = vpow2.f32 %v1245_v24 }
 0x5bc   : > { %v1702_v34 = vpop.eup %1701 }
 0x5bd   : > { %v1247_v35 = vsel %vm1240_vm2, %v1702_v34, 0.0 }
 0x5be   : > { %1248 = vadd.xlane.f32.xlu0 %v1247_v35 }
 0x5c1   : > { %v1405_v12 = vpop.permute.xlu2 %1404 }
 0x5c9   : > { %v1412_v37 = vpop.permute.xlu2 %1411  ;;  %v1518_v41 = vpop.permute.xlu1 %1517 }
 0x5ca   : > { %v1414_v38 = vmul.f32 %v1412_v37, %v2071_v20  ;;  %v1528_v42 = vmin.f32 %v2007_v57, %v1518_v41  ;;  %v2120_v20 = vld [vmem:[%s1856_s26] sm:$0x3]  ;;  %v1387_v57 = vadd.s32 8, %v1898_v18 }
 0x5cb   : > { %vm1508_vm6 = vcmp.ne.s32.totalorder %v2120_v20, 0 }
 0x5cc   : > { %v1436_v25 = vperm.slane %v1414_v38, 0  ;;  %v1443_v39 = vperm.slane %v1414_v38, 1  ;;  %vm1391_vm12 = vcmp.eq.s32.totalorder %v1387_v57, %v1937_v28 }
 0x5cd   : > { %1627 = vmatpush.msk.msrb.mxu0 %vm1391_vm12, %v1723_v45 }
 0x5ce   : > { %1441 = vperm.xlu2 %1662, %v1436_v25   ;;  %1448 = vperm.xlu1 %1660, %v1443_v39  }
 0x5cf   : > { %1628 = vmatpush.msk.msrb.mxu0 %vm1390_vm13, %v1723_v45 }
 0x5d2   : > { %1524 = vperm.xlu0 %1661, %v1519_v40  }
 0x5d6   : > { %1664 = vset.pattern.permute.xlu1 %v1716_v11  ;;  %1663 = vset.pattern.permute.xlu2 %v1716_v11 }
 0x5d7   : > { %1533 = vperm.xlu1 %1664, %v1528_v42   ;;  %1498 = vperm.xlu2 %1663, %v2120_v20  }
 0x5d9   : > { %v1422_v59 = vpop.permute.xlu2 %1421 }
 0x5da   : > { %1665 = vset.pattern.permute.xlu0 %v1716_v11  ;;  %vm1430_vm3 = vcmp.eq.s32.totalorder %v1422_v59, %v1937_v28 }
 0x5db   : > { %v1623_v43 = vsel %vm1430_vm3, 1.0, %v1717_v30 }
 0x5e1   : > { %v1429_v60 = vpop.permute.xlu2 %1428 }
 0x5e2   : > { %vm1431_vm2 = vcmp.eq.s32.totalorder %v1429_v60, %v1937_v28 }
 0x5e3   : > { %v1624_v4 = vsel %vm1431_vm2, 1.0, %v1717_v30 }
 0x628   : > { %v1442_v61 = vpop.permute.xlu2 %1441 }
 0x629   : > { %v1450_v8 = vmul.f32 %v1623_v43, %v1442_v61 }
 0x631   : > { %v1249_v11 = vpop.xlane.xlu0 %1248  ;;  %v1499_v1 = vpop.permute.xlu2 %1498 }
 0x632   : > { %1703 = vrcp.f32 %v1249_v11  ;;  %v1261_v48 = vand.u32 2147483648, %v1249_v11  ;;  %v1259_v50 = vand.u32 2147483647, %v1249_v11  ;;  %vm1255_vm15 = vweird.f32 %v1249_v11 }
 0x633   : > { %vm1500_vm4 = vcmp.eq.s32.totalorder %v1499_v1, %v1937_v28 }
 0x634   : > { %v1262_v52 = vor.u32 1.1754944e-38, %v1261_v48  ;;  %vm1260_vm1 = vcmp.eq.f32.partialorder %v1259_v50, 8.507059e+37  ;;  %v1630_v32 = vsel %vm1500_vm4, 1.0, %v1717_v30 }
 0x638   : > { %v1704_v23 = vpop.eup %1703 }
 0x639   : > { %v1251_v46 = vmul.f32 %v1704_v23, %v1249_v11  ;;  %vm1256_vm14 = vweird.f32 %v1704_v23 }
 0x63a   : > { %vm1257_vm0 = vmor %vm1255_vm15, %vm1256_vm14 }
 0x63b   : > { %v1252_v47 = vsub.f32 1.0, %v1251_v46 }
 0x63d   : > { %v1253_v49 = vmul.f32 %v1704_v23, %v1252_v47 }
 0x63f   : > { %v1254_v51 = vadd.f32 %v1704_v23, %v1253_v49 }
 0x640   : > { %v1449_v63 = vpop.permute.xlu1 %1448 }
 0x641   : > { %v1258_v53 = vsel %vm1257_vm0, %v1704_v23, %v1254_v51  ;;  %v1451_v6 = vmul.f32 %v1624_v4, %v1449_v63 }
 0x642   : > { %v1263_v54 = vsel %vm1260_vm1, %v1262_v52, %v1258_v53 }
 0x643   : > { %v1264_v55 = vmul.f32 %v1702_v34, %v1263_v54 }
 0x644   : > { %v1525_v56 = vpop.permute.xlu0 %1524 }
 0x645   : > { %v1529_v18 = vmin.f32 %v2014_v0, %v1525_v56  ;;  %v1407_v58 = vmul.f32 %v1405_v12, %v1264_v55 }
 0x647   : > { %1629 = vmatmul.msk.f32.vlgmr.msrb.gmra.mxu0 %vm714_vm5, %v1407_v58  ;;  %1536 = vperm.xlu2 %1663, %v1529_v18   ;;  %vm1452_vm5 = vcmask 277504  }
 0x648   : > { %v1460_v9 = vsel %vm1452_vm5, %v1451_v6, 0.0  ;;  %v1453_v10 = vsel %vm1452_vm5, %v1450_v8, 0.0 }
 0x649   : > { %v1534_v2 = vpop.permute.xlu1 %1533  ;;  %v1461_v13 = vrot.slane %v1460_v9, 4  ;;  %v1454_v14 = vrot.slane %v1453_v10, 4 }
 0x64a   : > { %v1538_v62 = vperm.slane %v1534_v2, %v1937_v28 }
 0x64b   : > { %v1462_v15 = vadd.f32 %v1461_v13, %v1460_v9  ;;  %v1455_v16 = vadd.f32 %v1454_v14, %v1453_v10 }
 0x64d   : > { %v1463_v17 = vrot.slane %v1462_v15, 2  ;;  %v1456_v19 = vrot.slane %v1455_v16, 2 }
 0x64f   : > { %v1464_v21 = vadd.f32 %v1463_v17, %v1462_v15  ;;  %v1457_v26 = vadd.f32 %v1456_v19, %v1455_v16 }
 0x651   : > { %v1465_v27 = vrot.slane %v1464_v21, 1  ;;  %v1458_v29 = vrot.slane %v1457_v26, 1 }
 0x653   : > { %v1466_v22 = vadd.f32 %v1465_v27, %v1464_v21  ;;  %v1459_v31 = vadd.f32 %v1458_v29, %v1457_v26 }
 0x655   : > { %v1471_v33 = vsel %vm881_vm7, %v1466_v22, %v1459_v31 }
 0x6a1   : > { %v1537_v3 = vpop.permute.xlu2 %1536 }
 0x6a2   : > { %v1539_v0 = vperm.slane %v1537_v3, %v1937_v28  ;;  %v1631_v28 = vsel %vm1508_vm6, 1.0, %v1717_v30 }
 0x6a4   : > { %v1540_v5 = vsel %vm881_vm7, %v1539_v0, %v1538_v62  ;;  %vm1553_vm7 = vcmask 1024  }
 0x6a5   : > { %v1542_v7 = vsel %vm884_vm8, %v1540_v5, 0.0  ;;  %vm1504_vm8 = vcmask 271360  }
 0x6a6   : > { %1543 = vadd.xlane.f32.xlu0 %v1542_v7 }
 0x6c4   : > { %v1493_v24 = vpop.f32.mrf.mxu0 }
 0x6c5   : > { %v1494_v34 = vadd.f32 %v1493_v24, %v1471_v33 }
 0x6c7   : > { %v1503_v35 = vmul.f32 %v1630_v32, %v1494_v34 }
 0x6c9   : > { %v1505_v12 = vsel %vm1504_vm8, %v1503_v35, 0.0 }
 0x6ca   : > { %1506 = vadd.xlane.f32.xlu1 %v1505_v12 }
 0x719   : > { %v1544_v41 = vpop.xlane.xlu0 %1543 }
 0x73d   : > { %v1507_v37 = vpop.xlane.xlu1 %1506 }
 0x73e   : > { %v1545_v38 = vadd.f32 1e-12, %v1507_v37 }
 0x740   : > { %1705 = vlog2.f32 %v1545_v38 }
 0x746   : > { %v1706_v25 = vpop.eup %1705 }
 0x747   : > { %v1547_v39 = vmul.f32 0.6931472, %v1706_v25 }
 0x749   : > { %v1548_v40 = vsub.f32 0.0, %v1547_v39 }
 0x74b   : > { %v1549_v42 = vadd.f32 %v1548_v40, %v1544_v41 }
 0x74d   : > { %v1550_v36 = vmul.f32 %v1631_v28, %v1549_v42 }
 0x74f   : > { %v1552_v45 = vadd.f32 %v1551_v44, %v1550_v36 }
 0x751   : > { %1554 = vst.msk [vmem:[%s2176_s22] sm:$0x3] %vm1553_vm7, %v1552_v45 }
 0x752 PF: > { %s2196_s2 = sld [smem:[#allocation7_spill]] }
 0x758   : > { %s34_s29 = sadd.s32 1, %s2196_s2  }
 0x759   : > { %p31_p5 = scmp.ge.s32.totalorder %s34_s29, 6  }
 0x75b   :  { %33 = sbr.rel (!%p31_p5) target bundleno = 9 (0x9), region = 141 }

</bundles_post_ra>
